<compile_context>
chip_gen: v5e
topology: v5e:2x2
jax: 0.10.0
libtpu: 0.0.40
codegen_flags: <defaults>
</compile_context>

<pallas_src>
import math
import numpy as np

import jax
import jax.numpy as jnp
from jax import lax
from jax.experimental import pallas as pl
from jax.experimental.pallas import tpu as pltpu

EPS = 1e-5          # RMSNorm eps (nn module default)
NEG_BIG = -1e30     # finite "-inf" for the causal bias (no NaN risk)


def _pick_tile(n, candidates):
    """Largest candidate tile that divides n (falls back to the full extent)."""
    for t in candidates:
        if n % t == 0:
            return t
    return n


def _vmem_limit_bytes():
    """Generation-aware scoped-VMEM budget (v7x: 64 MiB physical; v5e/v6e: 128 MiB)."""
    cap = 0
    try:
        cap = int(getattr(pltpu.get_tpu_info(), "vmem_capacity_bytes", 0))
    except Exception:
        cap = 0
    if cap and cap <= 64 * 1024 * 1024:
        return 48 * 1024 * 1024            # leave headroom for Mosaic internal scratch
    return 100 * 1024 * 1024               # 128-MiB-VMEM generations


def _const_spec(block_shape, index_map, single_buffer):
    """BlockSpec for a constant-index operand; request a single VMEM buffer if supported."""
    if single_buffer and hasattr(pl, "Buffered"):
        try:
            return pl.BlockSpec(block_shape, index_map, pipeline_mode=pl.Buffered(1))
        except TypeError:
            pass
    return pl.BlockSpec(block_shape, index_map)


# --------------- kernel A: RMSNorm1 + fused QKV projection + RoPE (row tiled) -------------
def _make_qkv_rope_kernel(D, H, hd, compute_dtype):
    dh = D // 2
    half = hd // 2

    def kernel(x_ref, cos_ref, sin_ref, ln1_ref, wqkv_ref, q_ref, k_ref, v_ref):
        x = x_ref[...].astype(jnp.float32)                              # (TM, D)
        inv_rms = lax.rsqrt(jnp.mean(x * x, axis=-1, keepdims=True) + EPS)
        nx = (x * inv_rms * ln1_ref[...]).astype(compute_dtype)

        qkv = jnp.dot(nx, wqkv_ref[...], preferred_element_type=jnp.float32)  # (TM, 3D)
        q, k, v = qkv[:, :D], qkv[:, D:2 * D], qkv[:, 2 * D:]

        cos = cos_ref[...]                                              # (TM, D/2) f32
        sin = sin_ref[...]
        # grouped [all heads' evens | all heads' odds] layout -> ONE full-width RoPE op
        qe = q[:, :dh] * cos - q[:, dh:] * sin
        qo = q[:, :dh] * sin + q[:, dh:] * cos
        ke = k[:, :dh] * cos - k[:, dh:] * sin
        ko = k[:, :dh] * sin + k[:, dh:] * cos

        # write head-major (H, TM, hd) tiles (no XLA head-split afterwards); per-head tile
        # is assembled once so the store is as lane-dense as the layout allows.
        for h in range(H):
            sl = slice(h * half, (h + 1) * half)
            q_ref[h] = jnp.concatenate([qe[:, sl], qo[:, sl]], axis=-1).astype(compute_dtype)
            k_ref[h] = jnp.concatenate([ke[:, sl], ko[:, sl]], axis=-1).astype(compute_dtype)
            v_ref[h] = v[:, h * hd:(h + 1) * hd].astype(compute_dtype)

    return kernel


# --------------- kernel B: causal flash attention (grid B, H, q, kv) ----------------------
def _make_flash_attn_kernel(tq, tk, compute_dtype):
    def kernel(q_ref, k_ref, v_ref, o_ref, m_sc, l_sc, acc_sc):
        qi = pl.program_id(2)
        ki = pl.program_id(3)

        @pl.when(ki == 0)
        def _init():
            m_sc[...] = jnp.full(m_sc.shape, NEG_BIG, jnp.float32)
            l_sc[...] = jnp.zeros(l_sc.shape, jnp.float32)
            acc_sc[...] = jnp.zeros(acc_sc.shape, jnp.float32)

        # Skip KV tiles that lie entirely in the causal future of this Q tile
        # (their DMA is also elided via the clamped index map in the wrapper).
        @pl.when(ki * tk <= qi * tq + (tq - 1))
        def _compute():
            q = q_ref[0]                                               # (TQ, hd), pre-scaled
            k = k_ref[0]                                               # (TK, hd)
            s = lax.dot_general(q, k, (((1,), (1,)), ((), ())),
                                preferred_element_type=jnp.float32)
            row = qi * tq + lax.broadcasted_iota(jnp.int32, (tq, tk), 0)
            col = ki * tk + lax.broadcasted_iota(jnp.int32, (tq, tk), 1)
            s = jnp.where(col <= row, s, NEG_BIG)                      # one select per tile

            m_prev = m_sc[...]
            m_new = jnp.maximum(m_prev, jnp.max(s, axis=-1, keepdims=True))
            alpha = jnp.exp(m_prev - m_new)
            p = jnp.exp(s - m_new)
            l_sc[...] = alpha * l_sc[...] + jnp.sum(p, axis=-1, keepdims=True)
            acc_sc[...] = alpha * acc_sc[...] + jnp.dot(
                p.astype(compute_dtype), v_ref[0],                     # bf16 p -> MXU
                preferred_element_type=jnp.float32)
            m_sc[...] = m_new

        @pl.when(ki == pl.num_programs(3) - 1)
        def _finalize():
            o_ref[0] = (acc_sc[...] * pl.reciprocal(l_sc[...], approx=True)
                        ).astype(o_ref.dtype)

    return kernel


# --------------- kernel C: per-head out-proj + residual + RMSNorm2 + SwiGLU ---------------
def _make_out_ffn_kernel(H, num_ff_tiles, compute_dtype):
    def kernel(x_ref, ctx_ref, ln2_ref, wo_ref, w1_ref, w3_ref, w2_ref,
               out_ref, x1_sc, nx2_sc, acc_sc):
        f = pl.program_id(1)

        @pl.when(f == 0)
        def _init():
            # per-head output projection: ctx (H, TM, hd) @ wo (H, hd, D), summed over heads
            attn = jnp.dot(ctx_ref[0], wo_ref[0], preferred_element_type=jnp.float32)
            for h in range(1, H):
                attn = attn + jnp.dot(ctx_ref[h], wo_ref[h],
                                      preferred_element_type=jnp.float32)
            x1 = x_ref[...].astype(jnp.float32) + attn                 # residual 1
            x1_sc[...] = x1
            inv_rms = lax.rsqrt(jnp.mean(x1 * x1, axis=-1, keepdims=True) + EPS)
            nx2_sc[...] = (x1 * inv_rms * ln2_ref[...]).astype(compute_dtype)
            acc_sc[...] = jnp.zeros(acc_sc.shape, jnp.float32)

        nx2 = nx2_sc[...]
        a = jnp.dot(nx2, w1_ref[...], preferred_element_type=jnp.float32)   # (TM, TF)
        b = jnp.dot(nx2, w3_ref[...], preferred_element_type=jnp.float32)
        silu_a = a * pl.reciprocal(1.0 + jnp.exp(-a), approx=True)          # SiLU via EUP
        g = (silu_a * b).astype(compute_dtype)
        acc_sc[...] += jnp.dot(g, w2_ref[...], preferred_element_type=jnp.float32)

        @pl.when(f == num_ff_tiles - 1)
        def _finalize():
            out_ref[...] = (x1_sc[...] + acc_sc[...]).astype(out_ref.dtype)  # residual 2

    return kernel


# --------------- wrapper -------------------------------------------------------------------
def _forward(x, params, compute_dtype, single_buffer):
    B, S, D = x.shape
    H = int(params["n_head"])
    hd = D // H
    d_ff = params["w1"].shape[1]
    theta = float(params["theta"])
    cdt = compute_dtype
    R = B * S
    vmem_limit = _vmem_limit_bytes()

    # RoPE tables: (S, D/2) f32, grouped [all-even | all-odd] column layout (no B× duplication).
    pos = jnp.arange(S, dtype=jnp.float32)
    inv_freq = jnp.exp(jnp.arange(0, hd, 2, dtype=jnp.float32) * (-math.log(theta) / hd))
    ang = pos[:, None] * inv_freq[None, :]                             # (S, hd/2)
    cos_g = jnp.tile(jnp.cos(ang), (1, H))                             # (S, D/2)
    sin_g = jnp.tile(jnp.sin(ang), (1, H))

    # Wq/Wk column permutation -> grouped [all heads' evens | all heads' odds]; fold the
    # 1/sqrt(hd) softmax scale into Wq; fuse Q|K|V into ONE (D, 3D) weight.
    even = np.arange(0, hd, 2)
    odd = np.arange(1, hd, 2)
    perm = np.concatenate([np.concatenate([h * hd + even for h in range(H)]),
                           np.concatenate([h * hd + odd for h in range(H)])])
    wq_g = params["wq"][:, perm] * (float(hd) ** -0.5)
    wk_g = params["wk"][:, perm]
    wqkv = jnp.concatenate([wq_g, wk_g, params["wv"]], axis=1).astype(cdt)   # (D, 3D)
    wo3 = params["wo"].reshape(H, hd, D).astype(cdt)                          # per-head Wo
    w1 = params["w1"].astype(cdt)
    w3 = params["w3"].astype(cdt)
    w2 = params["w2"].astype(cdt)
    ln1 = params["ln1"].reshape(1, D).astype(jnp.float32)
    ln2 = params["ln2"].reshape(1, D).astype(jnp.float32)

    x2d = x.reshape(R, D)            # keep input dtype; cast to f32 inside the kernels

    TM = _pick_tile(S, (256, 128, 64, 32, 16, 8))   # TM | S -> cos/sin rows tile by i % (S//TM)
    n_row = R // TM

    # ---------------- kernel A: RMSNorm1 + fused QKV + RoPE ----------------
    q3, k3, v3 = pl.pallas_call(
        _make_qkv_rope_kernel(D, H, hd, cdt),
        grid=(n_row,),
        out_shape=[jax.ShapeDtypeStruct((H, R, hd), cdt)] * 3,
        in_specs=[
            pl.BlockSpec((TM, D), lambda i: (i, 0)),                         # x rows
            pl.BlockSpec((TM, D // 2), lambda i: (i % (S // TM), 0)),        # cos
            pl.BlockSpec((TM, D // 2), lambda i: (i % (S // TM), 0)),        # sin
            _const_spec((1, D), lambda i: (0, 0), single_buffer),            # ln1
            _const_spec((D, 3 * D), lambda i: (0, 0), single_buffer),        # fused Wqkv
        ],
        out_specs=[pl.BlockSpec((H, TM, hd), lambda i: (0, i, 0))] * 3,
        compiler_params=pltpu.CompilerParams(
            dimension_semantics=("parallel",), vmem_limit_bytes=vmem_limit),
    )(x2d, cos_g, sin_g, ln1, wqkv)

    # ---------------- kernel B: causal flash attention ----------------
    TQ = _pick_tile(S, (128, 64, 32, 16, 8))
    TK = _pick_tile(S, (256, 128, 64, 32, 16, 8))    # 256-wide N feeds the v6e/v7x MXU
    nq, nk = S // TQ, S // TK

    def q_map(b, h, qi, ki):
        return (h, b * nq + qi, 0)

    def kv_map(b, h, qi, ki):
        kmax = (qi * TQ + TQ - 1) // TK              # clamp -> skipped KV tiles are not DMA'd
        return (h, b * nk + jnp.minimum(ki, kmax), 0)

    ctx = pl.pallas_call(
        _make_flash_attn_kernel(TQ, TK, cdt),
        grid=(B, H, nq, nk),
        out_shape=jax.ShapeDtypeStruct((H, R, hd), cdt),
        in_specs=[
            pl.BlockSpec((1, TQ, hd), q_map),
            pl.BlockSpec((1, TK, hd), kv_map),
            pl.BlockSpec((1, TK, hd), kv_map),
        ],
        out_specs=pl.BlockSpec((1, TQ, hd), q_map),
        scratch_shapes=[
            pltpu.VMEM((TQ, 1), jnp.float32),        # running max
            pltpu.VMEM((TQ, 1), jnp.float32),        # running denominator
            pltpu.VMEM((TQ, hd), jnp.float32),       # output accumulator
        ],
        compiler_params=pltpu.CompilerParams(
            dimension_semantics=("parallel", "parallel", "parallel", "arbitrary"),
            vmem_limit_bytes=vmem_limit),
    )(q3, k3, v3)

    # ---------------- kernel C: out-proj + residual + RMSNorm2 + SwiGLU ----------------
    TF = _pick_tile(d_ff, (512, 256, 128, 64, 32, 16, 8))
    nf = d_ff // TF
    out2d = pl.pallas_call(
        _make_out_ffn_kernel(H, nf, cdt),
        grid=(n_row, nf),
        out_shape=jax.ShapeDtypeStruct((R, D), x.dtype),
        in_specs=[
            pl.BlockSpec((TM, D), lambda i, f: (i, 0)),                      # x rows (residual)
            pl.BlockSpec((H, TM, hd), lambda i, f: (0, i, 0)),               # attention context
            _const_spec((1, D), lambda i, f: (0, 0), single_buffer),         # ln2
            _const_spec((H, hd, D), lambda i, f: (0, 0, 0), single_buffer),  # per-head Wo
            pl.BlockSpec((D, TF), lambda i, f: (0, f)),                      # w1 tile
            pl.BlockSpec((D, TF), lambda i, f: (0, f)),                      # w3 tile
            pl.BlockSpec((TF, D), lambda i, f: (f, 0)),                      # w2 tile
        ],
        out_specs=pl.BlockSpec((TM, D), lambda i, f: (i, 0)),
        scratch_shapes=[
            pltpu.VMEM((TM, D), jnp.float32),                                # x1 (residual 1)
            pltpu.VMEM((TM, D), cdt),                                        # normed x1
            pltpu.VMEM((TM, D), jnp.float32),                                # FFN accumulator
        ],
        compiler_params=pltpu.CompilerParams(
            dimension_semantics=("parallel", "arbitrary"),
            vmem_limit_bytes=vmem_limit),
    )(x2d, ctx, ln2, wo3, w1, w3, w2)

    return out2d.reshape(B, S, D)


def transformer_block_pallas(x, params, compute_dtype=jnp.bfloat16):
    try:
        return _forward(x, params, compute_dtype, single_buffer=True)
    except Exception:
        # Fallback for jax builds without BlockSpec(pipeline_mode=pl.Buffered(1)) support.
        return _forward(x, params, compute_dtype, single_buffer=False)


# --------------- pure-JAX reference (PyTorch semantics, f32 / HIGHEST) ---------------------
def transformer_block_ref(x, params, theta):
    HI = jax.lax.Precision.HIGHEST
    B, S, D = x.shape
    n_head = int(params["n_head"])
    hd = D // n_head

    def rmsnorm(y, w):
        rms = jnp.sqrt(jnp.mean(y * y, axis=-1, keepdims=True) + EPS)
        return y / rms * w

    nx = rmsnorm(x, params["ln1"])
    q = jnp.matmul(nx, params["wq"], precision=HI)
    k = jnp.matmul(nx, params["wk"], precision=HI)
    v = jnp.matmul(nx, params["wv"], precision=HI)
    q = q.reshape(B, S, n_head, hd).transpose(0, 2, 1, 3)
    k = k.reshape(B, S, n_head, hd).transpose(0, 2, 1, 3)
    v = v.reshape(B, S, n_head, hd).transpose(0, 2, 1, 3)

    pos = jnp.arange(S, dtype=jnp.float32)
    inv = jnp.exp(jnp.arange(0, hd, 2, dtype=jnp.float32) * (-math.log(theta) / hd))
    ang = pos[:, None] * inv[None, :]
    cos, sin = jnp.cos(ang), jnp.sin(ang)

    def rope(t):  # interleaved even/odd, like the torch module
        te, to = t[..., 0::2], t[..., 1::2]
        re = te * cos - to * sin
        ro = te * sin + to * cos
        return jnp.stack([re, ro], axis=-1).reshape(t.shape)

    q, k = rope(q), rope(k)
    scores = jnp.matmul(q, jnp.swapaxes(k, -1, -2), precision=HI) * hd ** -0.5
    mask = jnp.tril(jnp.ones((S, S), dtype=bool))
    scores = jnp.where(mask, scores, -jnp.inf)
    m = jnp.max(scores, axis=-1, keepdims=True)
    p = jnp.exp(scores - m)
    p = p / jnp.sum(p, axis=-1, keepdims=True)
    ctx = jnp.matmul(p, v, precision=HI)
    ctx = ctx.transpose(0, 2, 1, 3).reshape(B, S, D)
    x1 = x + jnp.matmul(ctx, params["wo"], precision=HI)
    nx2 = rmsnorm(x1, params["ln2"])
    a = jnp.matmul(nx2, params["w1"], precision=HI)
    a = a * jax.nn.sigmoid(a)
    b = jnp.matmul(nx2, params["w3"], precision=HI)
    ffn = jnp.matmul(a * b, params["w2"], precision=HI)
    return x1 + ffn


if __name__ == "__main__":
    B, S, D, NH, FF = 2, 8, 32, 2, 64
    THETA = 10000.0

    key = jax.random.PRNGKey(0)
    ks = jax.random.split(key, 8)

    def trunc_normal(k, shape, fan_in, fan_out):
        std = math.sqrt(2.0 / (fan_in + fan_out))
        return std * jax.random.truncated_normal(k, -3.0, 3.0, shape, dtype=jnp.float32)

    wq = trunc_normal(ks[0], (D, D), D, D)
    wk = trunc_normal(ks[1], (D, D), D, D)
    wv = trunc_normal(ks[2], (D, D), D, D)
    wo = trunc_normal(ks[3], (D, D), D, D)
    w1 = trunc_normal(ks[4], (D, FF), D, FF)
    w3 = trunc_normal(ks[5], (D, FF), D, FF)
    w2 = trunc_normal(ks[6], (FF, D), FF, D)
    ln1 = jnp.ones((D,), jnp.float32)
    ln2 = jnp.ones((D,), jnp.float32)
    x = jax.random.normal(ks[7], (B, S, D), dtype=jnp.float32)

    params = dict(n_head=NH, theta=THETA, wq=wq, wk=wk, wv=wv, wo=wo,
                  w1=w1, w3=w3, w2=w2, ln1=ln1, ln2=ln2)

    ref = transformer_block_ref(x, params, THETA)

    # f32 compute path: semantics check against the PyTorch-equivalent f32 reference.
    out_f32 = jax.block_until_ready(
        transformer_block_pallas(x, params, compute_dtype=jnp.float32))
    np.testing.assert_allclose(np.asarray(out_f32), np.asarray(ref), rtol=2e-2, atol=2e-2)

    # bf16 compute path (default fast path): bf16-MXU tolerance vs the f32 reference.
    out_bf16 = jax.block_until_ready(
        transformer_block_pallas(x, params, compute_dtype=jnp.bfloat16))
    np.testing.assert_allclose(np.asarray(out_bf16), np.asarray(ref), rtol=1.5e-1, atol=1.5e-1)

    print("KERNEL_OK")
</pallas_src>

<mosaic_0001>
module attributes {stable_mosaic.version = 11 : i64} {
  func.func @kernel(%arg0: i32, %arg1: memref<8x32xf32, #tpu.memory_space<vmem>>, %arg2: memref<8x16xf32, #tpu.memory_space<vmem>>, %arg3: memref<8x16xf32, #tpu.memory_space<vmem>>, %arg4: memref<1x32xf32, #tpu.memory_space<vmem>>, %arg5: memref<32x96xf32, #tpu.memory_space<vmem>>, %arg6: memref<2x8x16xf32, #tpu.memory_space<vmem>>, %arg7: memref<2x8x16xf32, #tpu.memory_space<vmem>>, %arg8: memref<2x8x16xf32, #tpu.memory_space<vmem>>) attributes {dimension_semantics = [#tpu.dimension_semantics<parallel>], iteration_bounds = array<i64: 2>, scalar_prefetch = 0 : i64, scratch_operands = 0 : i64, tpu.core_type = #tpu.core_type<tc>, window_params = [{transform_indices = @transform_0, window_bounds = array<i64: 8, 32>}, {transform_indices = @transform_1, window_bounds = array<i64: 8, 16>}, {transform_indices = @transform_2, window_bounds = array<i64: 8, 16>}, {pipeline_mode = #tpu.pipeline_mode<synchronous>, transform_indices = @transform_3, window_bounds = array<i64: 1, 32>}, {pipeline_mode = #tpu.pipeline_mode<synchronous>, transform_indices = @transform_4, window_bounds = array<i64: 32, 96>}, {transform_indices = @transform_5, window_bounds = array<i64: 2, 8, 16>}, {transform_indices = @transform_6, window_bounds = array<i64: 2, 8, 16>}, {transform_indices = @transform_7, window_bounds = array<i64: 2, 8, 16>}]} {
    %c0 = arith.constant 0 : index
    %c0_0 = arith.constant 0 : index
    %0 = vector.load %arg1[%c0, %c0_0] : memref<8x32xf32, #tpu.memory_space<vmem>>, vector<8x32xf32>
    %1 = arith.mulf %0, %0 : vector<8x32xf32>
    %cst = arith.constant dense<0.000000e+00> : vector<8xf32>
    %2 = vector.multi_reduction <add>, %1, %cst [1] : vector<8x32xf32> to vector<8xf32>
    %3 = vector.shape_cast %2 : vector<8xf32> to vector<8x1xf32>
    %cst_1 = arith.constant 3.200000e+01 : f32
    %4 = vector.broadcast %cst_1 : f32 to vector<8x1xf32>
    %5 = arith.divf %3, %4 : vector<8x1xf32>
    %cst_2 = arith.constant 9.99999974E-6 : f32
    %6 = vector.broadcast %cst_2 : f32 to vector<8x1xf32>
    %7 = arith.addf %5, %6 : vector<8x1xf32>
    %8 = math.rsqrt %7 : vector<8x1xf32>
    %9 = vector.broadcast %8 : vector<8x1xf32> to vector<8x32xf32>
    %10 = arith.mulf %0, %9 : vector<8x32xf32>
    %c0_3 = arith.constant 0 : index
    %c0_4 = arith.constant 0 : index
    %11 = vector.load %arg4[%c0_3, %c0_4] : memref<1x32xf32, #tpu.memory_space<vmem>>, vector<1x32xf32>
    %12 = vector.broadcast %11 : vector<1x32xf32> to vector<8x32xf32>
    %13 = arith.mulf %10, %12 : vector<8x32xf32>
    %c0_5 = arith.constant 0 : index
    %c0_6 = arith.constant 0 : index
    %14 = vector.load %arg5[%c0_5, %c0_6] : memref<32x96xf32, #tpu.memory_space<vmem>>, vector<32x96xf32>
    %cst_7 = arith.constant dense<0.000000e+00> : vector<8x96xf32>
    %15 = tpu.matmul %13, %14, %cst_7 {dimension_numbers = #tpu.dot_dimension_numbers<[1], [0], [0], [1], [0, 0, 1, 1], [], []>} : vector<8x32xf32>, vector<32x96xf32>, vector<8x96xf32> -> vector<8x96xf32>
    %16 = vector.extract_strided_slice %15 {offsets = [0, 0], sizes = [8, 32], strides = [1, 1]} : vector<8x96xf32> to vector<8x32xf32>
    %17 = vector.extract_strided_slice %15 {offsets = [0, 32], sizes = [8, 32], strides = [1, 1]} : vector<8x96xf32> to vector<8x32xf32>
    %18 = vector.extract_strided_slice %15 {offsets = [0, 64], sizes = [8, 32], strides = [1, 1]} : vector<8x96xf32> to vector<8x32xf32>
    %c0_8 = arith.constant 0 : index
    %c0_9 = arith.constant 0 : index
    %19 = vector.load %arg2[%c0_8, %c0_9] : memref<8x16xf32, #tpu.memory_space<vmem>>, vector<8x16xf32>
    %c0_10 = arith.constant 0 : index
    %c0_11 = arith.constant 0 : index
    %20 = vector.load %arg3[%c0_10, %c0_11] : memref<8x16xf32, #tpu.memory_space<vmem>>, vector<8x16xf32>
    %21 = vector.extract_strided_slice %16 {offsets = [0, 0], sizes = [8, 16], strides = [1, 1]} : vector<8x32xf32> to vector<8x16xf32>
    %22 = arith.mulf %21, %19 : vector<8x16xf32>
    %23 = vector.extract_strided_slice %16 {offsets = [0, 16], sizes = [8, 16], strides = [1, 1]} : vector<8x32xf32> to vector<8x16xf32>
    %24 = arith.mulf %23, %20 : vector<8x16xf32>
    %25 = arith.subf %22, %24 : vector<8x16xf32>
    %26 = vector.extract_strided_slice %16 {offsets = [0, 0], sizes = [8, 16], strides = [1, 1]} : vector<8x32xf32> to vector<8x16xf32>
    %27 = arith.mulf %26, %20 : vector<8x16xf32>
    %28 = vector.extract_strided_slice %16 {offsets = [0, 16], sizes = [8, 16], strides = [1, 1]} : vector<8x32xf32> to vector<8x16xf32>
    %29 = arith.mulf %28, %19 : vector<8x16xf32>
    %30 = arith.addf %27, %29 : vector<8x16xf32>
    %31 = vector.extract_strided_slice %17 {offsets = [0, 0], sizes = [8, 16], strides = [1, 1]} : vector<8x32xf32> to vector<8x16xf32>
    %32 = arith.mulf %31, %19 : vector<8x16xf32>
    %33 = vector.extract_strided_slice %17 {offsets = [0, 16], sizes = [8, 16], strides = [1, 1]} : vector<8x32xf32> to vector<8x16xf32>
    %34 = arith.mulf %33, %20 : vector<8x16xf32>
    %35 = arith.subf %32, %34 : vector<8x16xf32>
    %36 = vector.extract_strided_slice %17 {offsets = [0, 0], sizes = [8, 16], strides = [1, 1]} : vector<8x32xf32> to vector<8x16xf32>
    %37 = arith.mulf %36, %20 : vector<8x16xf32>
    %38 = vector.extract_strided_slice %17 {offsets = [0, 16], sizes = [8, 16], strides = [1, 1]} : vector<8x32xf32> to vector<8x16xf32>
    %39 = arith.mulf %38, %19 : vector<8x16xf32>
    %40 = arith.addf %37, %39 : vector<8x16xf32>
    %41 = vector.extract_strided_slice %25 {offsets = [0, 0], sizes = [8, 8], strides = [1, 1]} : vector<8x16xf32> to vector<8x8xf32>
    %42 = vector.extract_strided_slice %30 {offsets = [0, 0], sizes = [8, 8], strides = [1, 1]} : vector<8x16xf32> to vector<8x8xf32>
    %43 = tpu.concatenate %41, %42 in 1 : vector<8x8xf32>, vector<8x8xf32> -> vector<8x16xf32>
    %c0_12 = arith.constant 0 : index
    %c0_13 = arith.constant 0 : index
    %c0_14 = arith.constant 0 : index
    %44 = vector.load %arg6[%c0_12, %c0_13, %c0_14] : memref<2x8x16xf32, #tpu.memory_space<vmem>>, vector<1x8x16xf32>
    %45 = vector.shape_cast %44 : vector<1x8x16xf32> to vector<8x16xf32>
    %46 = vector.shape_cast %43 : vector<8x16xf32> to vector<1x8x16xf32>
    tpu.vector_store %arg6[%c0_12, %c0_13, %c0_14], %46 {strides = array<i32>} : memref<2x8x16xf32, #tpu.memory_space<vmem>>, vector<1x8x16xf32>,
    %47 = vector.extract_strided_slice %35 {offsets = [0, 0], sizes = [8, 8], strides = [1, 1]} : vector<8x16xf32> to vector<8x8xf32>
    %48 = vector.extract_strided_slice %40 {offsets = [0, 0], sizes = [8, 8], strides = [1, 1]} : vector<8x16xf32> to vector<8x8xf32>
    %49 = tpu.concatenate %47, %48 in 1 : vector<8x8xf32>, vector<8x8xf32> -> vector<8x16xf32>
    %c0_15 = arith.constant 0 : index
    %c0_16 = arith.constant 0 : index
    %c0_17 = arith.constant 0 : index
    %50 = vector.load %arg7[%c0_15, %c0_16, %c0_17] : memref<2x8x16xf32, #tpu.memory_space<vmem>>, vector<1x8x16xf32>
    %51 = vector.shape_cast %50 : vector<1x8x16xf32> to vector<8x16xf32>
    %52 = vector.shape_cast %49 : vector<8x16xf32> to vector<1x8x16xf32>
    tpu.vector_store %arg7[%c0_15, %c0_16, %c0_17], %52 {strides = array<i32>} : memref<2x8x16xf32, #tpu.memory_space<vmem>>, vector<1x8x16xf32>,
    %53 = vector.extract_strided_slice %18 {offsets = [0, 0], sizes = [8, 16], strides = [1, 1]} : vector<8x32xf32> to vector<8x16xf32>
    %c0_18 = arith.constant 0 : index
    %c0_19 = arith.constant 0 : index
    %c0_20 = arith.constant 0 : index
    %54 = vector.load %arg8[%c0_18, %c0_19, %c0_20] : memref<2x8x16xf32, #tpu.memory_space<vmem>>, vector<1x8x16xf32>
    %55 = vector.shape_cast %54 : vector<1x8x16xf32> to vector<8x16xf32>
    %56 = vector.shape_cast %53 : vector<8x16xf32> to vector<1x8x16xf32>
    tpu.vector_store %arg8[%c0_18, %c0_19, %c0_20], %56 {strides = array<i32>} : memref<2x8x16xf32, #tpu.memory_space<vmem>>, vector<1x8x16xf32>,
    %57 = vector.extract_strided_slice %25 {offsets = [0, 8], sizes = [8, 8], strides = [1, 1]} : vector<8x16xf32> to vector<8x8xf32>
    %58 = vector.extract_strided_slice %30 {offsets = [0, 8], sizes = [8, 8], strides = [1, 1]} : vector<8x16xf32> to vector<8x8xf32>
    %59 = tpu.concatenate %57, %58 in 1 : vector<8x8xf32>, vector<8x8xf32> -> vector<8x16xf32>
    %c1 = arith.constant 1 : index
    %c0_21 = arith.constant 0 : index
    %c0_22 = arith.constant 0 : index
    %60 = vector.load %arg6[%c1, %c0_21, %c0_22] : memref<2x8x16xf32, #tpu.memory_space<vmem>>, vector<1x8x16xf32>
    %61 = vector.shape_cast %60 : vector<1x8x16xf32> to vector<8x16xf32>
    %62 = vector.shape_cast %59 : vector<8x16xf32> to vector<1x8x16xf32>
    tpu.vector_store %arg6[%c1, %c0_21, %c0_22], %62 {strides = array<i32>} : memref<2x8x16xf32, #tpu.memory_space<vmem>>, vector<1x8x16xf32>,
    %63 = vector.extract_strided_slice %35 {offsets = [0, 8], sizes = [8, 8], strides = [1, 1]} : vector<8x16xf32> to vector<8x8xf32>
    %64 = vector.extract_strided_slice %40 {offsets = [0, 8], sizes = [8, 8], strides = [1, 1]} : vector<8x16xf32> to vector<8x8xf32>
    %65 = tpu.concatenate %63, %64 in 1 : vector<8x8xf32>, vector<8x8xf32> -> vector<8x16xf32>
    %c1_23 = arith.constant 1 : index
    %c0_24 = arith.constant 0 : index
    %c0_25 = arith.constant 0 : index
    %66 = vector.load %arg7[%c1_23, %c0_24, %c0_25] : memref<2x8x16xf32, #tpu.memory_space<vmem>>, vector<1x8x16xf32>
    %67 = vector.shape_cast %66 : vector<1x8x16xf32> to vector<8x16xf32>
    %68 = vector.shape_cast %65 : vector<8x16xf32> to vector<1x8x16xf32>
    tpu.vector_store %arg7[%c1_23, %c0_24, %c0_25], %68 {strides = array<i32>} : memref<2x8x16xf32, #tpu.memory_space<vmem>>, vector<1x8x16xf32>,
    %69 = vector.extract_strided_slice %18 {offsets = [0, 16], sizes = [8, 16], strides = [1, 1]} : vector<8x32xf32> to vector<8x16xf32>
    %c1_26 = arith.constant 1 : index
    %c0_27 = arith.constant 0 : index
    %c0_28 = arith.constant 0 : index
    %70 = vector.load %arg8[%c1_26, %c0_27, %c0_28] : memref<2x8x16xf32, #tpu.memory_space<vmem>>, vector<1x8x16xf32>
    %71 = vector.shape_cast %70 : vector<1x8x16xf32> to vector<8x16xf32>
    %72 = vector.shape_cast %69 : vector<8x16xf32> to vector<1x8x16xf32>
    tpu.vector_store %arg8[%c1_26, %c0_27, %c0_28], %72 {strides = array<i32>} : memref<2x8x16xf32, #tpu.memory_space<vmem>>, vector<1x8x16xf32>,
    return
  }
  func.func @transform_0(%arg0: i32) -> (i32, i32) {
    %c0_i32 = arith.constant 0 : i32
    %c0_i32_0 = arith.constant 0 : i32
    return %arg0, %c0_i32 : i32, i32
  }
  func.func @transform_1(%arg0: i32) -> (i32, i32) {
    %c1_i32 = arith.constant 1 : i32
    %c0_i32 = arith.constant 0 : i32
    %0 = arith.cmpi eq, %c1_i32, %c0_i32 : i32
    %c1_i32_0 = arith.constant 1 : i32
    %1 = arith.select %0, %c1_i32_0, %c1_i32 : i32
    %2 = arith.remsi %arg0, %1 : i32
    %c0_i32_1 = arith.constant 0 : i32
    %3 = arith.cmpi ne, %2, %c0_i32_1 : i32
    %c0_i32_2 = arith.constant 0 : i32
    %4 = arith.cmpi slt, %2, %c0_i32_2 : i32
    %c0_i32_3 = arith.constant 0 : i32
    %5 = arith.cmpi slt, %1, %c0_i32_3 : i32
    %6 = arith.xori %4, %5 : i1
    %7 = arith.andi %6, %3 : i1
    %8 = arith.addi %2, %1 : i32
    %9 = arith.select %7, %8, %2 : i32
    %c0_i32_4 = arith.constant 0 : i32
    %c0_i32_5 = arith.constant 0 : i32
    return %9, %c0_i32_4 : i32, i32
  }
  func.func @transform_2(%arg0: i32) -> (i32, i32) {
    %c1_i32 = arith.constant 1 : i32
    %c0_i32 = arith.constant 0 : i32
    %0 = arith.cmpi eq, %c1_i32, %c0_i32 : i32
    %c1_i32_0 = arith.constant 1 : i32
    %1 = arith.select %0, %c1_i32_0, %c1_i32 : i32
    %2 = arith.remsi %arg0, %1 : i32
    %c0_i32_1 = arith.constant 0 : i32
    %3 = arith.cmpi ne, %2, %c0_i32_1 : i32
    %c0_i32_2 = arith.constant 0 : i32
    %4 = arith.cmpi slt, %2, %c0_i32_2 : i32
    %c0_i32_3 = arith.constant 0 : i32
    %5 = arith.cmpi slt, %1, %c0_i32_3 : i32
    %6 = arith.xori %4, %5 : i1
    %7 = arith.andi %6, %3 : i1
    %8 = arith.addi %2, %1 : i32
    %9 = arith.select %7, %8, %2 : i32
    %c0_i32_4 = arith.constant 0 : i32
    %c0_i32_5 = arith.constant 0 : i32
    return %9, %c0_i32_4 : i32, i32
  }
  func.func @transform_3(%arg0: i32) -> (i32, i32) {
    %c0_i32 = arith.constant 0 : i32
    %c0_i32_0 = arith.constant 0 : i32
    %c0_i32_1 = arith.constant 0 : i32
    return %c0_i32, %c0_i32_0 : i32, i32
  }
  func.func @transform_4(%arg0: i32) -> (i32, i32) {
    %c0_i32 = arith.constant 0 : i32
    %c0_i32_0 = arith.constant 0 : i32
    %c0_i32_1 = arith.constant 0 : i32
    return %c0_i32, %c0_i32_0 : i32, i32
  }
  func.func @transform_5(%arg0: i32) -> (i32, i32, i32) {
    %c0_i32 = arith.constant 0 : i32
    %c0_i32_0 = arith.constant 0 : i32
    %c0_i32_1 = arith.constant 0 : i32
    return %c0_i32, %arg0, %c0_i32_0 : i32, i32, i32
  }
  func.func @transform_6(%arg0: i32) -> (i32, i32, i32) {
    %c0_i32 = arith.constant 0 : i32
    %c0_i32_0 = arith.constant 0 : i32
    %c0_i32_1 = arith.constant 0 : i32
    return %c0_i32, %arg0, %c0_i32_0 : i32, i32, i32
  }
  func.func @transform_7(%arg0: i32) -> (i32, i32, i32) {
    %c0_i32 = arith.constant 0 : i32
    %c0_i32_0 = arith.constant 0 : i32
    %c0_i32_1 = arith.constant 0 : i32
    return %c0_i32, %arg0, %c0_i32_0 : i32, i32, i32
  }
}

module attributes {stable_mosaic.version = 11 : i64} {
  func.func @kernel(%arg0: i32, %arg1: memref<8x32xf32, #tpu.memory_space<vmem>>, %arg2: memref<8x16xf32, #tpu.memory_space<vmem>>, %arg3: memref<8x16xf32, #tpu.memory_space<vmem>>, %arg4: memref<1x32xf32, #tpu.memory_space<vmem>>, %arg5: memref<32x96xf32, #tpu.memory_space<vmem>>, %arg6: memref<2x8x16xf32, #tpu.memory_space<vmem>>, %arg7: memref<2x8x16xf32, #tpu.memory_space<vmem>>, %arg8: memref<2x8x16xf32, #tpu.memory_space<vmem>>) attributes {dimension_semantics = [#tpu.dimension_semantics<parallel>], iteration_bounds = array<i64: 2>, scalar_prefetch = 0 : i64, scratch_operands = 0 : i64, tpu.core_type = #tpu.core_type<tc>, window_params = [{transform_indices = @transform_0, window_bounds = array<i64: 8, 32>}, {transform_indices = @transform_1, window_bounds = array<i64: 8, 16>}, {transform_indices = @transform_2, window_bounds = array<i64: 8, 16>}, {pipeline_mode = #tpu.pipeline_mode<synchronous>, transform_indices = @transform_3, window_bounds = array<i64: 1, 32>}, {pipeline_mode = #tpu.pipeline_mode<synchronous>, transform_indices = @transform_4, window_bounds = array<i64: 32, 96>}, {transform_indices = @transform_5, window_bounds = array<i64: 2, 8, 16>}, {transform_indices = @transform_6, window_bounds = array<i64: 2, 8, 16>}, {transform_indices = @transform_7, window_bounds = array<i64: 2, 8, 16>}]} {
    %c0 = arith.constant 0 : index
    %c0_0 = arith.constant 0 : index
    %0 = vector.load %arg1[%c0, %c0_0] : memref<8x32xf32, #tpu.memory_space<vmem>>, vector<8x32xf32>
    %1 = arith.mulf %0, %0 : vector<8x32xf32>
    %cst = arith.constant dense<0.000000e+00> : vector<8xf32>
    %2 = vector.multi_reduction <add>, %1, %cst [1] : vector<8x32xf32> to vector<8xf32>
    %3 = vector.shape_cast %2 : vector<8xf32> to vector<8x1xf32>
    %cst_1 = arith.constant 3.200000e+01 : f32
    %4 = vector.broadcast %cst_1 : f32 to vector<8x1xf32>
    %5 = arith.divf %3, %4 : vector<8x1xf32>
    %cst_2 = arith.constant 9.99999974E-6 : f32
    %6 = vector.broadcast %cst_2 : f32 to vector<8x1xf32>
    %7 = arith.addf %5, %6 : vector<8x1xf32>
    %8 = math.rsqrt %7 : vector<8x1xf32>
    %9 = vector.broadcast %8 : vector<8x1xf32> to vector<8x32xf32>
    %10 = arith.mulf %0, %9 : vector<8x32xf32>
    %c0_3 = arith.constant 0 : index
    %c0_4 = arith.constant 0 : index
    %11 = vector.load %arg4[%c0_3, %c0_4] : memref<1x32xf32, #tpu.memory_space<vmem>>, vector<1x32xf32>
    %12 = vector.broadcast %11 : vector<1x32xf32> to vector<8x32xf32>
    %13 = arith.mulf %10, %12 : vector<8x32xf32>
    %c0_5 = arith.constant 0 : index
    %c0_6 = arith.constant 0 : index
    %14 = vector.load %arg5[%c0_5, %c0_6] : memref<32x96xf32, #tpu.memory_space<vmem>>, vector<32x96xf32>
    %cst_7 = arith.constant dense<0.000000e+00> : vector<8x96xf32>
    %15 = tpu.matmul %13, %14, %cst_7 {dimension_numbers = #tpu.dot_dimension_numbers<[1], [0], [0], [1], [0, 0, 1, 1], [], []>} : vector<8x32xf32>, vector<32x96xf32>, vector<8x96xf32> -> vector<8x96xf32>
    %16 = vector.extract_strided_slice %15 {offsets = [0, 0], sizes = [8, 32], strides = [1, 1]} : vector<8x96xf32> to vector<8x32xf32>
    %17 = vector.extract_strided_slice %15 {offsets = [0, 32], sizes = [8, 32], strides = [1, 1]} : vector<8x96xf32> to vector<8x32xf32>
    %18 = vector.extract_strided_slice %15 {offsets = [0, 64], sizes = [8, 32], strides = [1, 1]} : vector<8x96xf32> to vector<8x32xf32>
    %c0_8 = arith.constant 0 : index
    %c0_9 = arith.constant 0 : index
    %19 = vector.load %arg2[%c0_8, %c0_9] : memref<8x16xf32, #tpu.memory_space<vmem>>, vector<8x16xf32>
    %c0_10 = arith.constant 0 : index
    %c0_11 = arith.constant 0 : index
    %20 = vector.load %arg3[%c0_10, %c0_11] : memref<8x16xf32, #tpu.memory_space<vmem>>, vector<8x16xf32>
    %21 = vector.extract_strided_slice %16 {offsets = [0, 0], sizes = [8, 16], strides = [1, 1]} : vector<8x32xf32> to vector<8x16xf32>
    %22 = arith.mulf %21, %19 : vector<8x16xf32>
    %23 = vector.extract_strided_slice %16 {offsets = [0, 16], sizes = [8, 16], strides = [1, 1]} : vector<8x32xf32> to vector<8x16xf32>
    %24 = arith.mulf %23, %20 : vector<8x16xf32>
    %25 = arith.subf %22, %24 : vector<8x16xf32>
    %26 = vector.extract_strided_slice %16 {offsets = [0, 0], sizes = [8, 16], strides = [1, 1]} : vector<8x32xf32> to vector<8x16xf32>
    %27 = arith.mulf %26, %20 : vector<8x16xf32>
    %28 = vector.extract_strided_slice %16 {offsets = [0, 16], sizes = [8, 16], strides = [1, 1]} : vector<8x32xf32> to vector<8x16xf32>
    %29 = arith.mulf %28, %19 : vector<8x16xf32>
    %30 = arith.addf %27, %29 : vector<8x16xf32>
    %31 = vector.extract_strided_slice %17 {offsets = [0, 0], sizes = [8, 16], strides = [1, 1]} : vector<8x32xf32> to vector<8x16xf32>
    %32 = arith.mulf %31, %19 : vector<8x16xf32>
    %33 = vector.extract_strided_slice %17 {offsets = [0, 16], sizes = [8, 16], strides = [1, 1]} : vector<8x32xf32> to vector<8x16xf32>
    %34 = arith.mulf %33, %20 : vector<8x16xf32>
    %35 = arith.subf %32, %34 : vector<8x16xf32>
    %36 = vector.extract_strided_slice %17 {offsets = [0, 0], sizes = [8, 16], strides = [1, 1]} : vector<8x32xf32> to vector<8x16xf32>
    %37 = arith.mulf %36, %20 : vector<8x16xf32>
    %38 = vector.extract_strided_slice %17 {offsets = [0, 16], sizes = [8, 16], strides = [1, 1]} : vector<8x32xf32> to vector<8x16xf32>
    %39 = arith.mulf %38, %19 : vector<8x16xf32>
    %40 = arith.addf %37, %39 : vector<8x16xf32>
    %41 = vector.extract_strided_slice %25 {offsets = [0, 0], sizes = [8, 8], strides = [1, 1]} : vector<8x16xf32> to vector<8x8xf32>
    %42 = vector.extract_strided_slice %30 {offsets = [0, 0], sizes = [8, 8], strides = [1, 1]} : vector<8x16xf32> to vector<8x8xf32>
    %43 = tpu.concatenate %41, %42 in 1 : vector<8x8xf32>, vector<8x8xf32> -> vector<8x16xf32>
    %c0_12 = arith.constant 0 : index
    %c0_13 = arith.constant 0 : index
    %c0_14 = arith.constant 0 : index
    %44 = vector.load %arg6[%c0_12, %c0_13, %c0_14] : memref<2x8x16xf32, #tpu.memory_space<vmem>>, vector<1x8x16xf32>
    %45 = vector.shape_cast %44 : vector<1x8x16xf32> to vector<8x16xf32>
    %46 = vector.shape_cast %43 : vector<8x16xf32> to vector<1x8x16xf32>
    tpu.vector_store %arg6[%c0_12, %c0_13, %c0_14], %46 {strides = array<i32>} : memref<2x8x16xf32, #tpu.memory_space<vmem>>, vector<1x8x16xf32>,
    %47 = vector.extract_strided_slice %35 {offsets = [0, 0], sizes = [8, 8], strides = [1, 1]} : vector<8x16xf32> to vector<8x8xf32>
    %48 = vector.extract_strided_slice %40 {offsets = [0, 0], sizes = [8, 8], strides = [1, 1]} : vector<8x16xf32> to vector<8x8xf32>
    %49 = tpu.concatenate %47, %48 in 1 : vector<8x8xf32>, vector<8x8xf32> -> vector<8x16xf32>
    %c0_15 = arith.constant 0 : index
    %c0_16 = arith.constant 0 : index
    %c0_17 = arith.constant 0 : index
    %50 = vector.load %arg7[%c0_15, %c0_16, %c0_17] : memref<2x8x16xf32, #tpu.memory_space<vmem>>, vector<1x8x16xf32>
    %51 = vector.shape_cast %50 : vector<1x8x16xf32> to vector<8x16xf32>
    %52 = vector.shape_cast %49 : vector<8x16xf32> to vector<1x8x16xf32>
    tpu.vector_store %arg7[%c0_15, %c0_16, %c0_17], %52 {strides = array<i32>} : memref<2x8x16xf32, #tpu.memory_space<vmem>>, vector<1x8x16xf32>,
    %53 = vector.extract_strided_slice %18 {offsets = [0, 0], sizes = [8, 16], strides = [1, 1]} : vector<8x32xf32> to vector<8x16xf32>
    %c0_18 = arith.constant 0 : index
    %c0_19 = arith.constant 0 : index
    %c0_20 = arith.constant 0 : index
    %54 = vector.load %arg8[%c0_18, %c0_19, %c0_20] : memref<2x8x16xf32, #tpu.memory_space<vmem>>, vector<1x8x16xf32>
    %55 = vector.shape_cast %54 : vector<1x8x16xf32> to vector<8x16xf32>
    %56 = vector.shape_cast %53 : vector<8x16xf32> to vector<1x8x16xf32>
    tpu.vector_store %arg8[%c0_18, %c0_19, %c0_20], %56 {strides = array<i32>} : memref<2x8x16xf32, #tpu.memory_space<vmem>>, vector<1x8x16xf32>,
    %57 = vector.extract_strided_slice %25 {offsets = [0, 8], sizes = [8, 8], strides = [1, 1]} : vector<8x16xf32> to vector<8x8xf32>
    %58 = vector.extract_strided_slice %30 {offsets = [0, 8], sizes = [8, 8], strides = [1, 1]} : vector<8x16xf32> to vector<8x8xf32>
    %59 = tpu.concatenate %57, %58 in 1 : vector<8x8xf32>, vector<8x8xf32> -> vector<8x16xf32>
    %c1 = arith.constant 1 : index
    %c0_21 = arith.constant 0 : index
    %c0_22 = arith.constant 0 : index
    %60 = vector.load %arg6[%c1, %c0_21, %c0_22] : memref<2x8x16xf32, #tpu.memory_space<vmem>>, vector<1x8x16xf32>
    %61 = vector.shape_cast %60 : vector<1x8x16xf32> to vector<8x16xf32>
    %62 = vector.shape_cast %59 : vector<8x16xf32> to vector<1x8x16xf32>
    tpu.vector_store %arg6[%c1, %c0_21, %c0_22], %62 {strides = array<i32>} : memref<2x8x16xf32, #tpu.memory_space<vmem>>, vector<1x8x16xf32>,
    %63 = vector.extract_strided_slice %35 {offsets = [0, 8], sizes = [8, 8], strides = [1, 1]} : vector<8x16xf32> to vector<8x8xf32>
    %64 = vector.extract_strided_slice %40 {offsets = [0, 8], sizes = [8, 8], strides = [1, 1]} : vector<8x16xf32> to vector<8x8xf32>
    %65 = tpu.concatenate %63, %64 in 1 : vector<8x8xf32>, vector<8x8xf32> -> vector<8x16xf32>
    %c1_23 = arith.constant 1 : index
    %c0_24 = arith.constant 0 : index
    %c0_25 = arith.constant 0 : index
    %66 = vector.load %arg7[%c1_23, %c0_24, %c0_25] : memref<2x8x16xf32, #tpu.memory_space<vmem>>, vector<1x8x16xf32>
    %67 = vector.shape_cast %66 : vector<1x8x16xf32> to vector<8x16xf32>
    %68 = vector.shape_cast %65 : vector<8x16xf32> to vector<1x8x16xf32>
    tpu.vector_store %arg7[%c1_23, %c0_24, %c0_25], %68 {strides = array<i32>} : memref<2x8x16xf32, #tpu.memory_space<vmem>>, vector<1x8x16xf32>,
    %69 = vector.extract_strided_slice %18 {offsets = [0, 16], sizes = [8, 16], strides = [1, 1]} : vector<8x32xf32> to vector<8x16xf32>
    %c1_26 = arith.constant 1 : index
    %c0_27 = arith.constant 0 : index
    %c0_28 = arith.constant 0 : index
    %70 = vector.load %arg8[%c1_26, %c0_27, %c0_28] : memref<2x8x16xf32, #tpu.memory_space<vmem>>, vector<1x8x16xf32>
    %71 = vector.shape_cast %70 : vector<1x8x16xf32> to vector<8x16xf32>
    %72 = vector.shape_cast %69 : vector<8x16xf32> to vector<1x8x16xf32>
    tpu.vector_store %arg8[%c1_26, %c0_27, %c0_28], %72 {strides = array<i32>} : memref<2x8x16xf32, #tpu.memory_space<vmem>>, vector<1x8x16xf32>,
    return
  }
  func.func @transform_0(%arg0: i32) -> (i32, i32) {
    %c0_i32 = arith.constant 0 : i32
    %c0_i32_0 = arith.constant 0 : i32
    return %arg0, %c0_i32 : i32, i32
  }
  func.func @transform_1(%arg0: i32) -> (i32, i32) {
    %c1_i32 = arith.constant 1 : i32
    %c0_i32 = arith.constant 0 : i32
    %0 = arith.cmpi eq, %c1_i32, %c0_i32 : i32
    %c1_i32_0 = arith.constant 1 : i32
    %1 = arith.select %0, %c1_i32_0, %c1_i32 : i32
    %2 = arith.remsi %arg0, %1 : i32
    %c0_i32_1 = arith.constant 0 : i32
    %3 = arith.cmpi ne, %2, %c0_i32_1 : i32
    %c0_i32_2 = arith.constant 0 : i32
    %4 = arith.cmpi slt, %2, %c0_i32_2 : i32
    %c0_i32_3 = arith.constant 0 : i32
    %5 = arith.cmpi slt, %1, %c0_i32_3 : i32
    %6 = arith.xori %4, %5 : i1
    %7 = arith.andi %6, %3 : i1
    %8 = arith.addi %2, %1 : i32
    %9 = arith.select %7, %8, %2 : i32
    %c0_i32_4 = arith.constant 0 : i32
    %c0_i32_5 = arith.constant 0 : i32
    return %9, %c0_i32_4 : i32, i32
  }
  func.func @transform_2(%arg0: i32) -> (i32, i32) {
    %c1_i32 = arith.constant 1 : i32
    %c0_i32 = arith.constant 0 : i32
    %0 = arith.cmpi eq, %c1_i32, %c0_i32 : i32
    %c1_i32_0 = arith.constant 1 : i32
    %1 = arith.select %0, %c1_i32_0, %c1_i32 : i32
    %2 = arith.remsi %arg0, %1 : i32
    %c0_i32_1 = arith.constant 0 : i32
    %3 = arith.cmpi ne, %2, %c0_i32_1 : i32
    %c0_i32_2 = arith.constant 0 : i32
    %4 = arith.cmpi slt, %2, %c0_i32_2 : i32
    %c0_i32_3 = arith.constant 0 : i32
    %5 = arith.cmpi slt, %1, %c0_i32_3 : i32
    %6 = arith.xori %4, %5 : i1
    %7 = arith.andi %6, %3 : i1
    %8 = arith.addi %2, %1 : i32
    %9 = arith.select %7, %8, %2 : i32
    %c0_i32_4 = arith.constant 0 : i32
    %c0_i32_5 = arith.constant 0 : i32
    return %9, %c0_i32_4 : i32, i32
  }
  func.func @transform_3(%arg0: i32) -> (i32, i32) {
    %c0_i32 = arith.constant 0 : i32
    %c0_i32_0 = arith.constant 0 : i32
    %c0_i32_1 = arith.constant 0 : i32
    return %c0_i32, %c0_i32_0 : i32, i32
  }
  func.func @transform_4(%arg0: i32) -> (i32, i32) {
    %c0_i32 = arith.constant 0 : i32
    %c0_i32_0 = arith.constant 0 : i32
    %c0_i32_1 = arith.constant 0 : i32
    return %c0_i32, %c0_i32_0 : i32, i32
  }
  func.func @transform_5(%arg0: i32) -> (i32, i32, i32) {
    %c0_i32 = arith.constant 0 : i32
    %c0_i32_0 = arith.constant 0 : i32
    %c0_i32_1 = arith.constant 0 : i32
    return %c0_i32, %arg0, %c0_i32_0 : i32, i32, i32
  }
  func.func @transform_6(%arg0: i32) -> (i32, i32, i32) {
    %c0_i32 = arith.constant 0 : i32
    %c0_i32_0 = arith.constant 0 : i32
    %c0_i32_1 = arith.constant 0 : i32
    return %c0_i32, %arg0, %c0_i32_0 : i32, i32, i32
  }
  func.func @transform_7(%arg0: i32) -> (i32, i32, i32) {
    %c0_i32 = arith.constant 0 : i32
    %c0_i32_0 = arith.constant 0 : i32
    %c0_i32_1 = arith.constant 0 : i32
    return %c0_i32, %arg0, %c0_i32_0 : i32, i32, i32
  }
}

</mosaic_0001>

<bundles_post_ra>
// kernel: tpu_custom_call.1
= control target key start
LH: loop header
LB: loop body
LE: loop exit
PB: predicated region body
PF: predicated region fallthrough
CT: control target
= control target key end

     0   :  { %s1428_s0 = inlined_call_operand.hbm [shape: f32[16,32], index: 0, kind: input, shape index: {}]   ;;  %s1429_s1 = inlined_call_operand.hbm [shape: f32[8,16], index: 1, kind: input, shape index: {}]   ;;  %s1430_s2 = inlined_call_operand.hbm [shape: f32[8,16], index: 2, kind: input, shape index: {}]   ;;  %s1431_s3 = inlined_call_operand.vmem [shape: f32[1,32], index: 3, kind: input, shape index: {}]   ;;  %s1432_s4 = inlined_call_operand.hbm [shape: f32[32,96], index: 4, kind: input, shape index: {}]   ;;  %s1433_s5 = inlined_call_operand.hbm [shape: f32[2,16,16], index: 5, kind: output, shape index: {0}]   ;;  %s1434_s6 = inlined_call_operand.hbm [shape: f32[2,16,16], index: 6, kind: output, shape index: {1}]   ;;  %s1435_s7 = inlined_call_operand.hbm [shape: f32[2,16,16], index: 7, kind: output, shape index: {2}]  }
   0x1   :  { %1443 = sst [smem:[#allocation19_spill]] %s1428_s0 }
   0x2   :  { %1444 = sst [smem:[#allocation20_spill]] %s1429_s1 }
   0x3   :  { %1445 = sst [smem:[#allocation21_spill]] %s1430_s2 }
   0x4   :  { %13 = vsyncpa [#allocation3], 0 }
   0x5   :  { %15 = vsyncpa [#allocation3 + $0x1], 0 }
   0x6   :  { %16 = vsyncpa [#allocation6], 0 }
   0x7   :  { %17 = vsyncpa [#allocation9], 0 }
   0x8   :  { %18 = vsyncpa [#allocation4], 0 }
   0x9   :  { %20 = vsyncpa [#allocation4 + $0x1], 0 }
   0xa   :  { %21 = vsyncpa [#allocation12], 0 }
   0xb   :  { %23 = vsyncpa [#allocation12 + $0x1], 0  ;;  %s1183_s24 = smov 0   ;;  %s1185_s25 = smov 0  }
   0xc   :  { %s1187_s26 = smov 0   ;;  %s1189_s27 = smov 0  }
   0xd LB: > { %s1204_s28 = sadd.s32 4294967295, %s1123_s27   ;;  %s1436_s29 = sadd.s32 4294967294, %s1123_s27   ;;  %s1123_s27 = sphi %s1189_s27, %s1463_s27   ;;  %s1119_s26 = sphi %s1187_s26, %s1462_s26   ;;  %s1115_s25 = sphi %s1185_s25, %s1461_s25   ;;  %s1111_s24 = sphi %s1183_s24, %s1460_s24  }
   0xe   : > { %p49_p0 = scmp.ne.s32.totalorder %s1115_s25, %s1111_s24  ;;  %p50_p1 = scmp.eq.s32.totalorder %s1204_s28, 0 }
   0xf   : > { %p157_p2 = scmp.eq.s32.totalorder %s1204_s28, 1  ;;  %p163_p3 = scmp.eq.s32.totalorder %s1436_s29, 1 }
  0x10   : > { %p1215_p4 = por %p50_p1, %p49_p0  ;;  %p735_p5 = scmp.ge.s32.totalorder %s1123_s27, 1 }
  0x11   : > { %p1220_p6 = por %p163_p3, %p49_p0  ;;  %p222_p7 = scmp.lt.s32.totalorder %s1123_s27, 3 }
  0x12   : > { %s1448_s1 = sld [smem:[#allocation20_spill]]  ;;  %s1125_s13 = smov [#allocation5]  }
  0x13   : > { %p1228_p8 = pnand %p735_p5, %p222_p7  ;;  %s236_s14 = sshll.u32 %s1125_s13, 4  ;;  %s237_s14 = int_to_ptr.vmem [resolvable:$true] %s236_s14 }
  0x14   : > { %s1450_s2 = sld [smem:[#allocation21_spill]]  ;;  %s260_s21 = sshll.u32 %s1432_s4, 4  ;;  %s261_s21 = int_to_ptr.hbm [resolvable:$true] %s260_s21 }
  0x15   : > { %p782_p10 = pneg %p1228_p8  ;;  %s1126_s22 = smov [#allocation7]  }
  0x16   : > { %s248_s23 = sshll.u32 %s1126_s22, 4  ;;  %s1127_s9 = smov [#allocation8]   ;;  %s249_s23 = int_to_ptr.vmem [resolvable:$true] %s248_s23 }
  0x17   : > { %p1240_p11 = pnand %p782_p10, %p50_p1  ;;  %s262_s10 = sshll.u32 %s1127_s9, 4  ;;  %s263_s10 = int_to_ptr.vmem [resolvable:$true] %s262_s10 }
  0x18   : > { %s234_s11 = sshll.u32 %s1448_s1, 4  ;;  %s1128_s13 = smov 128   ;;  %s235_s11 = int_to_ptr.hbm [resolvable:$true] %s234_s11 }
  0x19   : > { %785 = dma.hbm_to_vmem [thread:$0]  (!%p1240_p11), %s235_s11, 128, %s237_s14, [#allocation6]  }
  0x1a   : > { %s246_s17 = sshll.u32 %s1450_s2, 4  ;;  %s1129_s15 = smov 8   ;;  %s247_s17 = int_to_ptr.hbm [resolvable:$true] %s246_s17 }
  0x1b   : > { %788 = dma.hbm_to_vmem [thread:$0]  (!%p1240_p11), %s247_s17, 128, %s249_s23, [#allocation6]  }
  0x1c   : > { %791 = dma.hbm_to_vmem [thread:$0]  (!%p1240_p11), %s261_s21, 512, %s263_s10, [#allocation9], %s1128_s13, %s1128_s13, %s1129_s15  }
  0x1d   : > { %s1254_s16 = sadd.s32 1, %s1123_s27   ;;  %s36_s14 = sadd.s32 1, %s1119_s26 }
  0x1e   : > { %s33_s11 = ssub.s32 %s1123_s27, %s1254_s16  ;;  %p43_p13 = scmp.ne.s32.totalorder %s1119_s26, %s1115_s25 }
  0x1f   : > { %p34_p12 = scmp.eq.s32.totalorder %s33_s11, 0  ;;  %p44_p0 = scmp.eq.s32.totalorder %s1123_s27, 0 }
  0x20   : > { %p1267_p3 = por %p157_p2, %p43_p13  ;;  %p809_p5 = scmp.lt.s32.totalorder %s1123_s27, 2 }
  0x21   : > { %s1263_s19 = scalar_select %p34_p12, %s1119_s26, %s36_s14  }
  0x22   : > { %s276_s20 = sand.u32 1, %s1119_s26   ;;  %s741_s22 = sshll.u32 %s1123_s27, 3 }
  0x23   : > { %p45_p7 = por %p44_p0, %p43_p13  ;;  %s740_s18 = sshll.u32 %s276_s20, 3 }
  0x24   : > { %s1453_s0 = sld [smem:[#allocation19_spill]]  ;;  %s280_s13 = scalar_lea.vmem [#allocation2], %s740_s18 }
  0x25   : > { %s288_s15 = sshll.u32 %s280_s13, 4  ;;  %p1277_p10 = pnand %p809_p5, %p45_p7  ;;  %s289_s15 = int_to_ptr.vmem [resolvable:$true] %s288_s15 }
  0x26   : > { %s277_s14 = scalar_lea.sflag [#allocation3], %s276_s20 }
  0x27   : > { %p963_p11 = pneg %p1277_p10 }
  0x2a   : > { %s284_s9 = scalar_lea.hbm %s1453_s0, %s741_s22  ;;  %s966_s18 = scalar_lea.hbm %s1453_s0, 16 }
  0x2b   : > { %s286_s10 = sshll.u32 %s284_s9, 4  ;;  %s287_s10 = int_to_ptr.hbm [resolvable:$true] %s286_s10 }
  0x2c   : > { %s959_s29 = sshra.s32 %s287_s10, 4  ;;  %s960_s29 = int_to_ptr.hbm [resolvable:$true] %s959_s29 }
  0x2d   : > { %s961_s1 = scalar_lea.hbm %s960_s29, 8  ;;  %p967_p0 = scmp.lt.s32.totalorder %s960_s29, %s1453_s0 }
  0x2e   : > { %p962_p2 = scmp.ne.s32.totalorder %s960_s29, %s961_s1  ;;  %p968_p5 = scmp.lt.s32.totalorder %s966_s18, %s961_s1 }
  0x30   : > { %p964_p12 = pnand %p963_p11, %p962_p2  ;;  %p969_p7 = por %p968_p5, %p967_p0 }
  0x32   : > { %p965_p13 = pneg %p964_p12 }
  0x34   : > { %p970_p9 = pnand %p969_p7, %p965_p13 }
  0x36   : > { %973 = shalt.err (!%p970_p9)
}
  0x37   : > { %795 = dma.hbm_to_vmem [thread:$0]  (!%p1277_p10), %s287_s10, 128, %s289_s15, %s277_s14  }
  0x38   : > { %297 = sbr.rel (%p1228_p8) target bundleno = 592 (0x250), region = 40  ;;  %s1294_s20 = sand.u32 (!%p1228_p8), 1, %s1115_s25  }
  0x39   : > { %s743_s13 = sshll.u32 (!%p1228_p8), %s1294_s20, 3  ;;  %s300_s22 = scalar_lea.sflag (!%p1228_p8), [#allocation3], %s1294_s20 }
  0x3a   : > { %s303_s21 = scalar_lea.vmem (!%p1228_p8), [#allocation2], %s743_s13 }
  0x3d   : > { %1090 = dma.done.wait (%p1215_p4), %s300_s22, 128  }
  0x3e   : > { %1092 = vsyncadd (%p1215_p4), %s300_s22, 4294967168 }
  0x3f   : > { %1094 = dma.done.wait (%p50_p1), [#allocation6], 256  }
  0x40   : > { %1096 = vsyncadd (%p50_p1), [#allocation6], 4294967040 }
  0x41   : > { %1098 = dma.done.wait (%p50_p1), [#allocation9], 512  }
  0x42   : > { %1100 = vsyncadd (%p50_p1), [#allocation9], 4294966784  ;;  %v360_v0 = vld [vmem:[%s303_s21] sm:$0xff]  ;;  %vm362_vm0 = vcmask 261120   ;;  %v1130_v3 = vmov 32.0   ;;  %v394_v7 = vld [vmem:[#allocation8 + $0x18] sm:$0xff] }
  0x43   : > { %v361_v1 = vmul.f32 %v360_v0, %v360_v0  ;;  %865 = vrcp.f32 %v1130_v3  ;;  %410 = vmatpush.msra.mxu0 %v394_v7  ;;  %v418_v8 = vld [vmem:[#allocation5] sm:$0xff]  ;;  %s1131_s1 = smov 48   ;;  %v392_v10 = vld [vmem:[#allocation8 + $0x8] sm:$0xff]  ;;  %s1132_s29 = smov 16   ;;  %v391_v12 = vld [vmem:[#allocation8] sm:$0xff]  ;;  %vm472_vm5 = vcmask 64512  }
  0x44   : > { %v393_v9 = vld [vmem:[#allocation8 + $0x10] sm:$0xff]  ;;  %459 = vrot.lane.b32.xlu1 %v418_v8, %s1131_s1  ;;  %433 = vrot.lane.b32.xlu2 %v418_v8, %s1132_s29  ;;  %v419_v14 = vld [vmem:[#allocation7] sm:$0xff]  ;;  %s1133_s30 = smov 32   ;;  %v864_v25 = vld [vmem:[%s1431_s3] ss:$0 sm:$0xff]  ;;  %s1134_s15 = smov 112  }
  0x45   : > { %v363_v2 = vsel %vm362_vm0, %v361_v1, 0.0  ;;  %411 = vmatpush.msra.mxu0 %v393_v9  ;;  %s1135_s11 = smov 88   ;;  %s1136_s14 = smov 96   ;;  %vm474_vm6 = vcmask 130048  }
  0x46   : > { %364 = vadd.xlane.f32.xlu0 %v363_v2  ;;  %s1137_s18 = smov 120   ;;  %s1138_s23 = smov 104  }
  0x47   : > { %412 = vmatpush.msra.mxu0 %v392_v10  ;;  %s1139_s9 = smov 64   ;;  %s1437_s13 = smov 8  }
  0x48   : > { %s1320_s22 = sshll.u32 %s1294_s20, 4  ;;  %s1323_s21 = sshll.u32 %s1204_s28, 3 }
  0x49   : > { %v866_v4 = vpop.eup %865  ;;  %413 = vmatpush.msra.mxu0 %v391_v12  ;;  %s533_s12 = scalar_lea.hbm %s1433_s5, %s1323_s21  ;;  %s345_s10 = scalar_lea.vmem [#allocation10], %s1320_s22 }
  0x4a   : > { %v367_v5 = vmul.f32 32.0, %v866_v4  ;;  %vm371_vm1 = vweird.f32 %v866_v4 }
  0x4c   : > { %v368_v6 = vsub.f32 1.0, %v367_v5  ;;  %422 = vrot.lane.b32.xlu1 %v419_v14, %s1132_s29  ;;  %442 = vrot.lane.b32.xlu2 %v418_v8, %s1133_s30  ;;  %s1327_s29 = scalar_lea.vmem [#allocation11], %s1320_s22 }
  0x4e   : > { %v369_v11 = vmul.f32 %v866_v4, %v368_v6 }
  0x50   : > { %v370_v13 = vadd.f32 %v866_v4, %v369_v11 }
  0x52   : > { %v372_v15 = vsel %vm371_vm1, %v866_v4, %v370_v13 }
  0x54   : > { %455 = vrot.lane.b32.xlu1 %v419_v14, %s1133_s30  ;;  %s1009_s30 = scalar_lea.hbm %s1433_s5, 32 }
  0x5a   : > { %446 = vrot.lane.b32.xlu0 %v419_v14, %s1131_s1 }
  0x9e   : > { %v434_v31 = vpop.permute.xlu2 %433 }
  0xa6   : > { %v443_v38 = vpop.permute.xlu2 %442 }
  0xb6   : > { %v460_v30 = vpop.permute.xlu1 %459 }
  0xb9   : > { %v365_v16 = vpop.xlane.xlu0 %364 }
  0xba   : > { %v373_v17 = vmul.f32 %v372_v15, %v365_v16 }
  0xbc   : > { %v374_v18 = vadd.f32 1e-05, %v373_v17 }
  0xbe   : > { %867 = vrsqrt.f32 %v374_v18  ;;  %vm381_vm3 = vweird.f32 %v374_v18  ;;  %v423_v36 = vpop.permute.xlu1 %422 }
  0xc4   : > { %v868_v19 = vpop.eup %867 }
  0xc5   : > { %v376_v20 = vmul.f32 %v868_v19, %v374_v18  ;;  %vm382_vm2 = vweird.f32 %v868_v19 }
  0xc6   : > { %vm383_vm4 = vmor %vm381_vm3, %vm382_vm2  ;;  %v456_v45 = vpop.permute.xlu1 %455 }
  0xc7   : > { %v377_v21 = vmul.f32 %v868_v19, %v376_v20 }
  0xc9   : > { %v378_v22 = vmul.f32 0.5, %v377_v21 }
  0xcb   : > { %v379_v23 = vsub.f32 1.5, %v378_v22 }
  0xcc   : > { %v447_v29 = vpop.permute.xlu0 %446 }
  0xcd   : > { %v380_v24 = vmul.f32 %v868_v19, %v379_v23 }
  0xcf   : > { %v384_v26 = vsel %vm383_vm4, %v868_v19, %v380_v24 }
  0xd0   : > { %v385_v27 = vmul.f32 %v384_v26, %v360_v0 }
  0xd2   : > { %v390_v28 = vmul.f32 %v864_v25, %v385_v27 }
  0xd4   : > { %750 = vmatmul.msk.f32.vlgmr.msra.gmra.mxu0 %vm362_vm0, %v390_v28 }
 0x151   : > { %v415_v32 = vpop.f32.mrf.mxu0 }
 0x152   : > { %v449_v33 = vmul.f32 %v447_v29, %v415_v32  ;;  %v462_v34 = vmul.f32 %v460_v30, %v415_v32  ;;  %v436_v35 = vmul.f32 %v434_v31, %v415_v32  ;;  %v425_v37 = vmul.f32 %v423_v36, %v415_v32 }
 0x153   : > { %v445_v39 = vmul.f32 %v443_v38, %v415_v32  ;;  %v420_v42 = vmul.f32 %v418_v8, %v415_v32  ;;  %v458_v46 = vmul.f32 %v456_v45, %v415_v32  ;;  %v431_v50 = vmul.f32 %v419_v14, %v415_v32 }
 0x154   : > { %464 = vrot.lane.b32.xlu1 %v462_v34, %s1134_s15  ;;  %438 = vrot.lane.b32.xlu0 %v436_v35, %s1134_s15 }
 0x155   : > { %451 = vrot.lane.b32.xlu2 %v449_v33, %s1134_s15 }
 0x15d   : > { %427 = vrot.lane.b32.xlu2 %v425_v37, %s1134_s15  ;;  %s534_s15 = sshll.u32 %s345_s10, 4  ;;  %s535_s15 = int_to_ptr.vmem [resolvable:$true] %s534_s15 }
 0x1af   : > { %v452_v40 = vpop.permute.xlu2 %451 }
 0x1b0   : > { %v454_v41 = vsub.f32 %v445_v39, %v452_v40 }
 0x1b2   : > { %498 = vrot.lane.b32.xlu0 %v454_v41, %s1135_s11  ;;  %477 = vrot.lane.b32.xlu1 %v454_v41, %s1136_s14  ;;  %s1336_s11 = sshll.u32 %s533_s12, 4  ;;  %s537_s11 = int_to_ptr.hbm [resolvable:$true] %s1336_s11 }
 0x1b7   : > { %v428_v43 = vpop.permute.xlu2 %427 }
 0x1b8   : > { %v430_v44 = vsub.f32 %v420_v42, %v428_v43 }
 0x1ba   : > { %492 = vrot.lane.b32.xlu0 %v430_v44, %s1137_s18  ;;  %s1003_s18 = sshra.s32 %s537_s11, 4  ;;  %s1004_s18 = int_to_ptr.hbm [resolvable:$true] %s1003_s18 }
 0x1bb   : > { %p1010_p9 = scmp.lt.s32.totalorder %s1004_s18, %s1433_s5 }
 0x1c6   : > { %v465_v47 = vpop.permute.xlu1 %464  ;;  %v439_v49 = vpop.permute.xlu0 %438 }
 0x1c7   : > { %v467_v48 = vadd.f32 %v465_v47, %v458_v46  ;;  %v441_v51 = vadd.f32 %v439_v49, %v431_v50 }
 0x1c9   : > { %481 = vrot.lane.b32.xlu2 %v467_v48, %s1138_s23  ;;  %501 = vrot.lane.b32.xlu1 %v467_v48, %s1136_s14  ;;  %s513_s14 = scalar_lea.sflag [#allocation4], %s1294_s20  ;;  %s1005_s23 = scalar_lea.hbm %s1004_s18, 16 }
 0x1ca   : > { %p1006_p1 = scmp.ne.s32.totalorder %s1004_s18, %s1005_s23  ;;  %p1011_p10 = scmp.lt.s32.totalorder %s1009_s30, %s1005_s23 }
 0x1cc   : > { %p1007_p4 = pnand %p1006_p1, %p1267_p3  ;;  %p1012_p2 = por %p1011_p10, %p1010_p9 }
 0x1ce   : > { %p1008_p8 = pneg %p1007_p4 }
 0x1d0   : > { %p1013_p11 = pnand %p1012_p2, %p1008_p8 }
 0x1d1   : > { %487 = vrot.lane.b32.xlu1 %v415_v32, %s1139_s9  ;;  %469 = vrot.lane.b32.xlu2 %v441_v51, %s1437_s13 }
 0x1d9   : > { %507 = vrot.lane.b32.xlu2 %v415_v32, %s1131_s1 }
 0x223   : > { %v482_v52 = vpop.permute.xlu2 %481 }
 0x224   : > { %v478_v53 = vpop.permute.xlu1 %477  ;;  %v499_v54 = vpop.permute.xlu0 %498 }
 0x225   : > { %v484_v55 = vsel %vm472_vm5, %v478_v53, %v482_v52 }
 0x226   : > { %485 = vst.msk [vmem:[%s1327_s29] sm:$0xff] %vm474_vm6, %v484_v55 }
 0x22b   : > { %v470_v56 = vpop.permute.xlu2 %469 }
 0x22c   : > { %v473_v57 = vsel %vm472_vm5, %v430_v44, %v470_v56  ;;  %v493_v58 = vpop.permute.xlu0 %492 }
 0x22d   : > { %475 = vst.msk [vmem:[%s345_s10] sm:$0xff] %vm474_vm6, %v473_v57  ;;  %v495_v59 = vsel %vm472_vm5, %v493_v58, %v441_v51 }
 0x22e   : > { %751 = vst.msk [vmem:[%s345_s10 + $0x8] sm:$0xff] %vm474_vm6, %v495_v59 }
 0x22f   : > { %1016 = shalt.err (!%p1013_p11)
}
 0x230   : > { %s1439_s20 = smov 128   ;;  %s1441_s10 = smov 256  }
 0x231   : > { %s1455_s9 = smov 8   ;;  %s1358_s13 = scalar_lea.vmem [#allocation13], %s1320_s22 }
 0x232   : > { %776 = dma.vmem_to_hbm [thread:$0]  (%p1267_p3), %s535_s15, 256, %s537_s11, %s513_s14, %s1439_s20, %s1441_s10, %s1455_s9  }
 0x233   : > { %v508_v60 = vpop.permute.xlu2 %507  ;;  %s549_s1 = scalar_lea.hbm %s1434_s6, %s1323_s21  ;;  %s550_s30 = sshll.u32 %s1327_s29, 4  ;;  %s551_s30 = int_to_ptr.vmem [resolvable:$true] %s550_s30 }
 0x234   : > { %753 = vst.msk [vmem:[%s1358_s13 + $0x8] sm:$0xff] %vm474_vm6, %v508_v60  ;;  %s517_s12 = sand.u32 1, %s1204_s28   ;;  %s552_s0 = sshll.u32 %s549_s1, 4  ;;  %s553_s0 = int_to_ptr.hbm [resolvable:$true] %s552_s0 }
 0x235   : > { %s565_s22 = scalar_lea.hbm %s1435_s7, %s1323_s21  ;;  %s1375_s14 = scalar_lea.sflag [#allocation12], %s517_s12 }
 0x236   : > { %s1031_s20 = sshra.s32 %s553_s0, 4  ;;  %s1037_s1 = scalar_lea.hbm %s1434_s6, 32  ;;  %s1032_s20 = int_to_ptr.hbm [resolvable:$true] %s1031_s20 }
 0x237   : > { %s1033_s18 = scalar_lea.hbm %s1032_s20, 16  ;;  %p1038_p5 = scmp.lt.s32.totalorder %s1032_s20, %s1434_s6 }
 0x238   : > { %p1034_p12 = scmp.ne.s32.totalorder %s1032_s20, %s1033_s18  ;;  %p1039_p7 = scmp.lt.s32.totalorder %s1037_s1, %s1033_s18 }
 0x23a   : > { %p1035_p13 = pnand %p1034_p12, %p1267_p3  ;;  %p1040_p1 = por %p1039_p7, %p1038_p5 }
 0x23b   : > { %v502_v61 = vpop.permute.xlu1 %501 }
 0x23c   : > { %v504_v62 = vsel %vm472_vm5, %v499_v54, %v502_v61  ;;  %p1036_p0 = pneg %p1035_p13 }
 0x23d   : > { %752 = vst.msk [vmem:[%s1327_s29 + $0x8] sm:$0xff] %vm474_vm6, %v504_v62 }
 0x23e   : > { %p1041_p4 = pnand %p1040_p1, %p1036_p0 }
 0x240   : > { %1044 = shalt.err (!%p1041_p4)
}
 0x241   : > { %s1456_s21 = smov 256   ;;  %s1457_s29 = smov 128  }
 0x242   : > { %777 = dma.vmem_to_hbm [thread:$0]  (%p1267_p3), %s551_s30, 256, %s553_s0, %s1375_s14, %s1457_s29, %s1456_s21, %s1455_s9  }
 0x243   : > { %s566_s12 = sshll.u32 %s1358_s13, 4  ;;  %s568_s15 = sshll.u32 %s565_s22, 4  ;;  %v488_v63 = vpop.permute.xlu1 %487  ;;  %s567_s12 = int_to_ptr.vmem [resolvable:$true] %s566_s12  ;;  %s569_s15 = int_to_ptr.hbm [resolvable:$true] %s568_s15 }
 0x244   : > { %490 = vst.msk [vmem:[%s1358_s13] sm:$0xff] %vm474_vm6, %v488_v63  ;;  %s1059_s2 = sshra.s32 %s569_s15, 4  ;;  %s1065_s18 = scalar_lea.hbm %s1435_s7, 32  ;;  %s1060_s2 = int_to_ptr.hbm [resolvable:$true] %s1059_s2 }
 0x245   : > { %s1061_s20 = scalar_lea.hbm %s1060_s2, 16  ;;  %p1066_p2 = scmp.lt.s32.totalorder %s1060_s2, %s1435_s7 }
 0x246   : > { %p1062_p8 = scmp.ne.s32.totalorder %s1060_s2, %s1061_s20  ;;  %p1067_p11 = scmp.lt.s32.totalorder %s1065_s18, %s1061_s20 }
 0x248   : > { %p1063_p9 = pnand %p1062_p8, %p1267_p3  ;;  %p1068_p12 = por %p1067_p11, %p1066_p2 }
 0x24a   : > { %p1064_p10 = pneg %p1063_p9 }
 0x24c   : > { %p1069_p13 = pnand %p1068_p12, %p1064_p10 }
 0x24e   : > { %1072 = shalt.err (!%p1069_p13)
}
 0x24f   : > { %778 = dma.vmem_to_hbm [thread:$0]  (%p1267_p3), %s567_s12, 256, %s569_s15, %s1375_s14, %s1457_s29, %s1456_s21, %s1455_s9  }
 0x250 PF: > { %s583_s13 = sand.u32 1, %s1111_s24   ;;  %p1458_p0 = scmp.ge.s32.totalorder %s1123_s27, 2 }
 0x251   : > { %s584_s30 = scalar_lea.sflag [#allocation4], %s583_s13 }
 0x252   : > { %p797_p5 = pnand %p1458_p0, %p1220_p6 }
 0x254   : > { %p798_p7 = pneg %p797_p5 }
 0x256   : > { %1102 = dma.done.wait (%p798_p7), %s584_s30, 256  }
 0x257   : > { %1104 = vsyncadd (%p798_p7), %s584_s30, 4294967040  ;;  %s1459_s22 = sadd.s32 4294967294, %s1123_s27  }
 0x258   : > { %s593_s17 = sand.u32 1, %s1459_s22  }
 0x259   : > { %s594_s23 = scalar_lea.sflag [#allocation12], %s593_s17 }
 0x25a   : > { %1106 = dma.done.wait (%p798_p7), %s594_s23, 512  }
 0x25b   : > { %1108 = vsyncadd (%p798_p7), %s594_s23, 4294966784  ;;  %p26_p3 = scmp.ge.s32.totalorder %s1254_s16, 4   ;;  %s1460_s24 = smov %s1115_s25 }
 0x25c   : > { %s1461_s25 = smov %s1119_s26  ;;  %s1462_s26 = smov %s1263_s19 }
 0x25d   : > { %s1463_s27 = smov %s1254_s16  ;;  %28 = sbr.rel (!%p26_p3) target bundleno = 13 (0xd), region = 132 }
 0x262   :  { %610 = vsyncpa [#allocation3], 1 }
 0x263   :  { %612 = vsyncpa [#allocation3 + $0x1], 1 }
 0x264   :  { %613 = vsyncpa [#allocation6], 1 }
 0x265   :  { %614 = vsyncpa [#allocation9], 1 }
 0x266   :  { %615 = vsyncpa [#allocation4], 1 }
 0x267   :  { %617 = vsyncpa [#allocation4 + $0x1], 1 }
 0x268   :  { %618 = vsyncpa [#allocation12], 1 }
 0x269   :  { %620 = vsyncpa [#allocation12 + $0x1], 1 }

// kernel: tpu_custom_call.1
= control target key start
LH: loop header
LB: loop body
LE: loop exit
PB: predicated region body
PF: predicated region fallthrough
CT: control target
= control target key end

     0   :  { %s1428_s0 = inlined_call_operand.hbm [shape: f32[16,32], index: 0, kind: input, shape index: {}]   ;;  %s1429_s1 = inlined_call_operand.hbm [shape: f32[8,16], index: 1, kind: input, shape index: {}]   ;;  %s1430_s2 = inlined_call_operand.hbm [shape: f32[8,16], index: 2, kind: input, shape index: {}]   ;;  %s1431_s3 = inlined_call_operand.vmem [shape: f32[1,32], index: 3, kind: input, shape index: {}]   ;;  %s1432_s4 = inlined_call_operand.hbm [shape: f32[32,96], index: 4, kind: input, shape index: {}]   ;;  %s1433_s5 = inlined_call_operand.hbm [shape: f32[2,16,16], index: 5, kind: output, shape index: {0}]   ;;  %s1434_s6 = inlined_call_operand.hbm [shape: f32[2,16,16], index: 6, kind: output, shape index: {1}]   ;;  %s1435_s7 = inlined_call_operand.hbm [shape: f32[2,16,16], index: 7, kind: output, shape index: {2}]  }
   0x1   :  { %1443 = sst [smem:[#allocation19_spill]] %s1428_s0 }
   0x2   :  { %1444 = sst [smem:[#allocation20_spill]] %s1429_s1 }
   0x3   :  { %1445 = sst [smem:[#allocation21_spill]] %s1430_s2 }
   0x4   :  { %13 = vsyncpa [#allocation3], 0 }
   0x5   :  { %15 = vsyncpa [#allocation3 + $0x1], 0 }
   0x6   :  { %16 = vsyncpa [#allocation6], 0 }
   0x7   :  { %17 = vsyncpa [#allocation9], 0 }
   0x8   :  { %18 = vsyncpa [#allocation4], 0 }
   0x9   :  { %20 = vsyncpa [#allocation4 + $0x1], 0 }
   0xa   :  { %21 = vsyncpa [#allocation12], 0 }
   0xb   :  { %23 = vsyncpa [#allocation12 + $0x1], 0  ;;  %s1183_s24 = smov 0   ;;  %s1185_s25 = smov 0  }
   0xc   :  { %s1187_s26 = smov 0   ;;  %s1189_s27 = smov 0  }
   0xd LB: > { %s1204_s28 = sadd.s32 4294967295, %s1123_s27   ;;  %s1436_s29 = sadd.s32 4294967294, %s1123_s27   ;;  %s1123_s27 = sphi %s1189_s27, %s1463_s27   ;;  %s1119_s26 = sphi %s1187_s26, %s1462_s26   ;;  %s1115_s25 = sphi %s1185_s25, %s1461_s25   ;;  %s1111_s24 = sphi %s1183_s24, %s1460_s24  }
   0xe   : > { %p49_p0 = scmp.ne.s32.totalorder %s1115_s25, %s1111_s24  ;;  %p50_p1 = scmp.eq.s32.totalorder %s1204_s28, 0 }
   0xf   : > { %p157_p2 = scmp.eq.s32.totalorder %s1204_s28, 1  ;;  %p163_p3 = scmp.eq.s32.totalorder %s1436_s29, 1 }
  0x10   : > { %p1215_p4 = por %p50_p1, %p49_p0  ;;  %p735_p5 = scmp.ge.s32.totalorder %s1123_s27, 1 }
  0x11   : > { %p1220_p6 = por %p163_p3, %p49_p0  ;;  %p222_p7 = scmp.lt.s32.totalorder %s1123_s27, 3 }
  0x12   : > { %s1448_s1 = sld [smem:[#allocation20_spill]]  ;;  %s1125_s13 = smov [#allocation5]  }
  0x13   : > { %p1228_p8 = pnand %p735_p5, %p222_p7  ;;  %s236_s14 = sshll.u32 %s1125_s13, 4  ;;  %s237_s14 = int_to_ptr.vmem [resolvable:$true] %s236_s14 }
  0x14   : > { %s1450_s2 = sld [smem:[#allocation21_spill]]  ;;  %s260_s21 = sshll.u32 %s1432_s4, 4  ;;  %s261_s21 = int_to_ptr.hbm [resolvable:$true] %s260_s21 }
  0x15   : > { %p782_p10 = pneg %p1228_p8  ;;  %s1126_s22 = smov [#allocation7]  }
  0x16   : > { %s248_s23 = sshll.u32 %s1126_s22, 4  ;;  %s1127_s9 = smov [#allocation8]   ;;  %s249_s23 = int_to_ptr.vmem [resolvable:$true] %s248_s23 }
  0x17   : > { %p1240_p11 = pnand %p782_p10, %p50_p1  ;;  %s262_s10 = sshll.u32 %s1127_s9, 4  ;;  %s263_s10 = int_to_ptr.vmem [resolvable:$true] %s262_s10 }
  0x18   : > { %s234_s11 = sshll.u32 %s1448_s1, 4  ;;  %s1128_s13 = smov 128   ;;  %s235_s11 = int_to_ptr.hbm [resolvable:$true] %s234_s11 }
  0x19   : > { %785 = dma.hbm_to_vmem [thread:$0]  (!%p1240_p11), %s235_s11, 128, %s237_s14, [#allocation6]  }
  0x1a   : > { %s246_s17 = sshll.u32 %s1450_s2, 4  ;;  %s1129_s15 = smov 8   ;;  %s247_s17 = int_to_ptr.hbm [resolvable:$true] %s246_s17 }
  0x1b   : > { %788 = dma.hbm_to_vmem [thread:$0]  (!%p1240_p11), %s247_s17, 128, %s249_s23, [#allocation6]  }
  0x1c   : > { %791 = dma.hbm_to_vmem [thread:$0]  (!%p1240_p11), %s261_s21, 512, %s263_s10, [#allocation9], %s1128_s13, %s1128_s13, %s1129_s15  }
  0x1d   : > { %s1254_s16 = sadd.s32 1, %s1123_s27   ;;  %s36_s14 = sadd.s32 1, %s1119_s26 }
  0x1e   : > { %s33_s11 = ssub.s32 %s1123_s27, %s1254_s16  ;;  %p43_p13 = scmp.ne.s32.totalorder %s1119_s26, %s1115_s25 }
  0x1f   : > { %p34_p12 = scmp.eq.s32.totalorder %s33_s11, 0  ;;  %p44_p0 = scmp.eq.s32.totalorder %s1123_s27, 0 }
  0x20   : > { %p1267_p3 = por %p157_p2, %p43_p13  ;;  %p809_p5 = scmp.lt.s32.totalorder %s1123_s27, 2 }
  0x21   : > { %s1263_s19 = scalar_select %p34_p12, %s1119_s26, %s36_s14  }
  0x22   : > { %s276_s20 = sand.u32 1, %s1119_s26   ;;  %s741_s22 = sshll.u32 %s1123_s27, 3 }
  0x23   : > { %p45_p7 = por %p44_p0, %p43_p13  ;;  %s740_s18 = sshll.u32 %s276_s20, 3 }
  0x24   : > { %s1453_s0 = sld [smem:[#allocation19_spill]]  ;;  %s280_s13 = scalar_lea.vmem [#allocation2], %s740_s18 }
  0x25   : > { %s288_s15 = sshll.u32 %s280_s13, 4  ;;  %p1277_p10 = pnand %p809_p5, %p45_p7  ;;  %s289_s15 = int_to_ptr.vmem [resolvable:$true] %s288_s15 }
  0x26   : > { %s277_s14 = scalar_lea.sflag [#allocation3], %s276_s20 }
  0x27   : > { %p963_p11 = pneg %p1277_p10 }
  0x2a   : > { %s284_s9 = scalar_lea.hbm %s1453_s0, %s741_s22  ;;  %s966_s18 = scalar_lea.hbm %s1453_s0, 16 }
  0x2b   : > { %s286_s10 = sshll.u32 %s284_s9, 4  ;;  %s287_s10 = int_to_ptr.hbm [resolvable:$true] %s286_s10 }
  0x2c   : > { %s959_s29 = sshra.s32 %s287_s10, 4  ;;  %s960_s29 = int_to_ptr.hbm [resolvable:$true] %s959_s29 }
  0x2d   : > { %s961_s1 = scalar_lea.hbm %s960_s29, 8  ;;  %p967_p0 = scmp.lt.s32.totalorder %s960_s29, %s1453_s0 }
  0x2e   : > { %p962_p2 = scmp.ne.s32.totalorder %s960_s29, %s961_s1  ;;  %p968_p5 = scmp.lt.s32.totalorder %s966_s18, %s961_s1 }
  0x30   : > { %p964_p12 = pnand %p963_p11, %p962_p2  ;;  %p969_p7 = por %p968_p5, %p967_p0 }
  0x32   : > { %p965_p13 = pneg %p964_p12 }
  0x34   : > { %p970_p9 = pnand %p969_p7, %p965_p13 }
  0x36   : > { %973 = shalt.err (!%p970_p9)
}
  0x37   : > { %795 = dma.hbm_to_vmem [thread:$0]  (!%p1277_p10), %s287_s10, 128, %s289_s15, %s277_s14  }
  0x38   : > { %297 = sbr.rel (%p1228_p8) target bundleno = 592 (0x250), region = 40  ;;  %s1294_s20 = sand.u32 (!%p1228_p8), 1, %s1115_s25  }
  0x39   : > { %s743_s13 = sshll.u32 (!%p1228_p8), %s1294_s20, 3  ;;  %s300_s22 = scalar_lea.sflag (!%p1228_p8), [#allocation3], %s1294_s20 }
  0x3a   : > { %s303_s21 = scalar_lea.vmem (!%p1228_p8), [#allocation2], %s743_s13 }
  0x3d   : > { %1090 = dma.done.wait (%p1215_p4), %s300_s22, 128  }
  0x3e   : > { %1092 = vsyncadd (%p1215_p4), %s300_s22, 4294967168 }
  0x3f   : > { %1094 = dma.done.wait (%p50_p1), [#allocation6], 256  }
  0x40   : > { %1096 = vsyncadd (%p50_p1), [#allocation6], 4294967040 }
  0x41   : > { %1098 = dma.done.wait (%p50_p1), [#allocation9], 512  }
  0x42   : > { %1100 = vsyncadd (%p50_p1), [#allocation9], 4294966784  ;;  %v360_v0 = vld [vmem:[%s303_s21] sm:$0xff]  ;;  %vm362_vm0 = vcmask 261120   ;;  %v1130_v3 = vmov 32.0   ;;  %v394_v7 = vld [vmem:[#allocation8 + $0x18] sm:$0xff] }
  0x43   : > { %v361_v1 = vmul.f32 %v360_v0, %v360_v0  ;;  %865 = vrcp.f32 %v1130_v3  ;;  %410 = vmatpush.msra.mxu0 %v394_v7  ;;  %v418_v8 = vld [vmem:[#allocation5] sm:$0xff]  ;;  %s1131_s1 = smov 48   ;;  %v392_v10 = vld [vmem:[#allocation8 + $0x8] sm:$0xff]  ;;  %s1132_s29 = smov 16   ;;  %v391_v12 = vld [vmem:[#allocation8] sm:$0xff]  ;;  %vm472_vm5 = vcmask 64512  }
  0x44   : > { %v393_v9 = vld [vmem:[#allocation8 + $0x10] sm:$0xff]  ;;  %459 = vrot.lane.b32.xlu1 %v418_v8, %s1131_s1  ;;  %433 = vrot.lane.b32.xlu2 %v418_v8, %s1132_s29  ;;  %v419_v14 = vld [vmem:[#allocation7] sm:$0xff]  ;;  %s1133_s30 = smov 32   ;;  %v864_v25 = vld [vmem:[%s1431_s3] ss:$0 sm:$0xff]  ;;  %s1134_s15 = smov 112  }
  0x45   : > { %v363_v2 = vsel %vm362_vm0, %v361_v1, 0.0  ;;  %411 = vmatpush.msra.mxu0 %v393_v9  ;;  %s1135_s11 = smov 88   ;;  %s1136_s14 = smov 96   ;;  %vm474_vm6 = vcmask 130048  }
  0x46   : > { %364 = vadd.xlane.f32.xlu0 %v363_v2  ;;  %s1137_s18 = smov 120   ;;  %s1138_s23 = smov 104  }
  0x47   : > { %412 = vmatpush.msra.mxu0 %v392_v10  ;;  %s1139_s9 = smov 64   ;;  %s1437_s13 = smov 8  }
  0x48   : > { %s1320_s22 = sshll.u32 %s1294_s20, 4  ;;  %s1323_s21 = sshll.u32 %s1204_s28, 3 }
  0x49   : > { %v866_v4 = vpop.eup %865  ;;  %413 = vmatpush.msra.mxu0 %v391_v12  ;;  %s533_s12 = scalar_lea.hbm %s1433_s5, %s1323_s21  ;;  %s345_s10 = scalar_lea.vmem [#allocation10], %s1320_s22 }
  0x4a   : > { %v367_v5 = vmul.f32 32.0, %v866_v4  ;;  %vm371_vm1 = vweird.f32 %v866_v4 }
  0x4c   : > { %v368_v6 = vsub.f32 1.0, %v367_v5  ;;  %422 = vrot.lane.b32.xlu1 %v419_v14, %s1132_s29  ;;  %442 = vrot.lane.b32.xlu2 %v418_v8, %s1133_s30  ;;  %s1327_s29 = scalar_lea.vmem [#allocation11], %s1320_s22 }
  0x4e   : > { %v369_v11 = vmul.f32 %v866_v4, %v368_v6 }
  0x50   : > { %v370_v13 = vadd.f32 %v866_v4, %v369_v11 }
  0x52   : > { %v372_v15 = vsel %vm371_vm1, %v866_v4, %v370_v13 }
  0x54   : > { %455 = vrot.lane.b32.xlu1 %v419_v14, %s1133_s30  ;;  %s1009_s30 = scalar_lea.hbm %s1433_s5, 32 }
  0x5a   : > { %446 = vrot.lane.b32.xlu0 %v419_v14, %s1131_s1 }
  0x9e   : > { %v434_v31 = vpop.permute.xlu2 %433 }
  0xa6   : > { %v443_v38 = vpop.permute.xlu2 %442 }
  0xb6   : > { %v460_v30 = vpop.permute.xlu1 %459 }
  0xb9   : > { %v365_v16 = vpop.xlane.xlu0 %364 }
  0xba   : > { %v373_v17 = vmul.f32 %v372_v15, %v365_v16 }
  0xbc   : > { %v374_v18 = vadd.f32 1e-05, %v373_v17 }
  0xbe   : > { %867 = vrsqrt.f32 %v374_v18  ;;  %vm381_vm3 = vweird.f32 %v374_v18  ;;  %v423_v36 = vpop.permute.xlu1 %422 }
  0xc4   : > { %v868_v19 = vpop.eup %867 }
  0xc5   : > { %v376_v20 = vmul.f32 %v868_v19, %v374_v18  ;;  %vm382_vm2 = vweird.f32 %v868_v19 }
  0xc6   : > { %vm383_vm4 = vmor %vm381_vm3, %vm382_vm2  ;;  %v456_v45 = vpop.permute.xlu1 %455 }
  0xc7   : > { %v377_v21 = vmul.f32 %v868_v19, %v376_v20 }
  0xc9   : > { %v378_v22 = vmul.f32 0.5, %v377_v21 }
  0xcb   : > { %v379_v23 = vsub.f32 1.5, %v378_v22 }
  0xcc   : > { %v447_v29 = vpop.permute.xlu0 %446 }
  0xcd   : > { %v380_v24 = vmul.f32 %v868_v19, %v379_v23 }
  0xcf   : > { %v384_v26 = vsel %vm383_vm4, %v868_v19, %v380_v24 }
  0xd0   : > { %v385_v27 = vmul.f32 %v384_v26, %v360_v0 }
  0xd2   : > { %v390_v28 = vmul.f32 %v864_v25, %v385_v27 }
  0xd4   : > { %750 = vmatmul.msk.f32.vlgmr.msra.gmra.mxu0 %vm362_vm0, %v390_v28 }
 0x151   : > { %v415_v32 = vpop.f32.mrf.mxu0 }
 0x152   : > { %v449_v33 = vmul.f32 %v447_v29, %v415_v32  ;;  %v462_v34 = vmul.f32 %v460_v30, %v415_v32  ;;  %v436_v35 = vmul.f32 %v434_v31, %v415_v32  ;;  %v425_v37 = vmul.f32 %v423_v36, %v415_v32 }
 0x153   : > { %v445_v39 = vmul.f32 %v443_v38, %v415_v32  ;;  %v420_v42 = vmul.f32 %v418_v8, %v415_v32  ;;  %v458_v46 = vmul.f32 %v456_v45, %v415_v32  ;;  %v431_v50 = vmul.f32 %v419_v14, %v415_v32 }
 0x154   : > { %464 = vrot.lane.b32.xlu1 %v462_v34, %s1134_s15  ;;  %438 = vrot.lane.b32.xlu0 %v436_v35, %s1134_s15 }
 0x155   : > { %451 = vrot.lane.b32.xlu2 %v449_v33, %s1134_s15 }
 0x15d   : > { %427 = vrot.lane.b32.xlu2 %v425_v37, %s1134_s15  ;;  %s534_s15 = sshll.u32 %s345_s10, 4  ;;  %s535_s15 = int_to_ptr.vmem [resolvable:$true] %s534_s15 }
 0x1af   : > { %v452_v40 = vpop.permute.xlu2 %451 }
 0x1b0   : > { %v454_v41 = vsub.f32 %v445_v39, %v452_v40 }
 0x1b2   : > { %498 = vrot.lane.b32.xlu0 %v454_v41, %s1135_s11  ;;  %477 = vrot.lane.b32.xlu1 %v454_v41, %s1136_s14  ;;  %s1336_s11 = sshll.u32 %s533_s12, 4  ;;  %s537_s11 = int_to_ptr.hbm [resolvable:$true] %s1336_s11 }
 0x1b7   : > { %v428_v43 = vpop.permute.xlu2 %427 }
 0x1b8   : > { %v430_v44 = vsub.f32 %v420_v42, %v428_v43 }
 0x1ba   : > { %492 = vrot.lane.b32.xlu0 %v430_v44, %s1137_s18  ;;  %s1003_s18 = sshra.s32 %s537_s11, 4  ;;  %s1004_s18 = int_to_ptr.hbm [resolvable:$true] %s1003_s18 }
 0x1bb   : > { %p1010_p9 = scmp.lt.s32.totalorder %s1004_s18, %s1433_s5 }
 0x1c6   : > { %v465_v47 = vpop.permute.xlu1 %464  ;;  %v439_v49 = vpop.permute.xlu0 %438 }
 0x1c7   : > { %v467_v48 = vadd.f32 %v465_v47, %v458_v46  ;;  %v441_v51 = vadd.f32 %v439_v49, %v431_v50 }
 0x1c9   : > { %481 = vrot.lane.b32.xlu2 %v467_v48, %s1138_s23  ;;  %501 = vrot.lane.b32.xlu1 %v467_v48, %s1136_s14  ;;  %s513_s14 = scalar_lea.sflag [#allocation4], %s1294_s20  ;;  %s1005_s23 = scalar_lea.hbm %s1004_s18, 16 }
 0x1ca   : > { %p1006_p1 = scmp.ne.s32.totalorder %s1004_s18, %s1005_s23  ;;  %p1011_p10 = scmp.lt.s32.totalorder %s1009_s30, %s1005_s23 }
 0x1cc   : > { %p1007_p4 = pnand %p1006_p1, %p1267_p3  ;;  %p1012_p2 = por %p1011_p10, %p1010_p9 }
 0x1ce   : > { %p1008_p8 = pneg %p1007_p4 }
 0x1d0   : > { %p1013_p11 = pnand %p1012_p2, %p1008_p8 }
 0x1d1   : > { %487 = vrot.lane.b32.xlu1 %v415_v32, %s1139_s9  ;;  %469 = vrot.lane.b32.xlu2 %v441_v51, %s1437_s13 }
 0x1d9   : > { %507 = vrot.lane.b32.xlu2 %v415_v32, %s1131_s1 }
 0x223   : > { %v482_v52 = vpop.permute.xlu2 %481 }
 0x224   : > { %v478_v53 = vpop.permute.xlu1 %477  ;;  %v499_v54 = vpop.permute.xlu0 %498 }
 0x225   : > { %v484_v55 = vsel %vm472_vm5, %v478_v53, %v482_v52 }
 0x226   : > { %485 = vst.msk [vmem:[%s1327_s29] sm:$0xff] %vm474_vm6, %v484_v55 }
 0x22b   : > { %v470_v56 = vpop.permute.xlu2 %469 }
 0x22c   : > { %v473_v57 = vsel %vm472_vm5, %v430_v44, %v470_v56  ;;  %v493_v58 = vpop.permute.xlu0 %492 }
 0x22d   : > { %475 = vst.msk [vmem:[%s345_s10] sm:$0xff] %vm474_vm6, %v473_v57  ;;  %v495_v59 = vsel %vm472_vm5, %v493_v58, %v441_v51 }
 0x22e   : > { %751 = vst.msk [vmem:[%s345_s10 + $0x8] sm:$0xff] %vm474_vm6, %v495_v59 }
 0x22f   : > { %1016 = shalt.err (!%p1013_p11)
}
 0x230   : > { %s1439_s20 = smov 128   ;;  %s1441_s10 = smov 256  }
 0x231   : > { %s1455_s9 = smov 8   ;;  %s1358_s13 = scalar_lea.vmem [#allocation13], %s1320_s22 }
 0x232   : > { %776 = dma.vmem_to_hbm [thread:$0]  (%p1267_p3), %s535_s15, 256, %s537_s11, %s513_s14, %s1439_s20, %s1441_s10, %s1455_s9  }
 0x233   : > { %v508_v60 = vpop.permute.xlu2 %507  ;;  %s549_s1 = scalar_lea.hbm %s1434_s6, %s1323_s21  ;;  %s550_s30 = sshll.u32 %s1327_s29, 4  ;;  %s551_s30 = int_to_ptr.vmem [resolvable:$true] %s550_s30 }
 0x234   : > { %753 = vst.msk [vmem:[%s1358_s13 + $0x8] sm:$0xff] %vm474_vm6, %v508_v60  ;;  %s517_s12 = sand.u32 1, %s1204_s28   ;;  %s552_s0 = sshll.u32 %s549_s1, 4  ;;  %s553_s0 = int_to_ptr.hbm [resolvable:$true] %s552_s0 }
 0x235   : > { %s565_s22 = scalar_lea.hbm %s1435_s7, %s1323_s21  ;;  %s1375_s14 = scalar_lea.sflag [#allocation12], %s517_s12 }
 0x236   : > { %s1031_s20 = sshra.s32 %s553_s0, 4  ;;  %s1037_s1 = scalar_lea.hbm %s1434_s6, 32  ;;  %s1032_s20 = int_to_ptr.hbm [resolvable:$true] %s1031_s20 }
 0x237   : > { %s1033_s18 = scalar_lea.hbm %s1032_s20, 16  ;;  %p1038_p5 = scmp.lt.s32.totalorder %s1032_s20, %s1434_s6 }
 0x238   : > { %p1034_p12 = scmp.ne.s32.totalorder %s1032_s20, %s1033_s18  ;;  %p1039_p7 = scmp.lt.s32.totalorder %s1037_s1, %s1033_s18 }
 0x23a   : > { %p1035_p13 = pnand %p1034_p12, %p1267_p3  ;;  %p1040_p1 = por %p1039_p7, %p1038_p5 }
 0x23b   : > { %v502_v61 = vpop.permute.xlu1 %501 }
 0x23c   : > { %v504_v62 = vsel %vm472_vm5, %v499_v54, %v502_v61  ;;  %p1036_p0 = pneg %p1035_p13 }
 0x23d   : > { %752 = vst.msk [vmem:[%s1327_s29 + $0x8] sm:$0xff] %vm474_vm6, %v504_v62 }
 0x23e   : > { %p1041_p4 = pnand %p1040_p1, %p1036_p0 }
 0x240   : > { %1044 = shalt.err (!%p1041_p4)
}
 0x241   : > { %s1456_s21 = smov 256   ;;  %s1457_s29 = smov 128  }
 0x242   : > { %777 = dma.vmem_to_hbm [thread:$0]  (%p1267_p3), %s551_s30, 256, %s553_s0, %s1375_s14, %s1457_s29, %s1456_s21, %s1455_s9  }
 0x243   : > { %s566_s12 = sshll.u32 %s1358_s13, 4  ;;  %s568_s15 = sshll.u32 %s565_s22, 4  ;;  %v488_v63 = vpop.permute.xlu1 %487  ;;  %s567_s12 = int_to_ptr.vmem [resolvable:$true] %s566_s12  ;;  %s569_s15 = int_to_ptr.hbm [resolvable:$true] %s568_s15 }
 0x244   : > { %490 = vst.msk [vmem:[%s1358_s13] sm:$0xff] %vm474_vm6, %v488_v63  ;;  %s1059_s2 = sshra.s32 %s569_s15, 4  ;;  %s1065_s18 = scalar_lea.hbm %s1435_s7, 32  ;;  %s1060_s2 = int_to_ptr.hbm [resolvable:$true] %s1059_s2 }
 0x245   : > { %s1061_s20 = scalar_lea.hbm %s1060_s2, 16  ;;  %p1066_p2 = scmp.lt.s32.totalorder %s1060_s2, %s1435_s7 }
 0x246   : > { %p1062_p8 = scmp.ne.s32.totalorder %s1060_s2, %s1061_s20  ;;  %p1067_p11 = scmp.lt.s32.totalorder %s1065_s18, %s1061_s20 }
 0x248   : > { %p1063_p9 = pnand %p1062_p8, %p1267_p3  ;;  %p1068_p12 = por %p1067_p11, %p1066_p2 }
 0x24a   : > { %p1064_p10 = pneg %p1063_p9 }
 0x24c   : > { %p1069_p13 = pnand %p1068_p12, %p1064_p10 }
 0x24e   : > { %1072 = shalt.err (!%p1069_p13)
}
 0x24f   : > { %778 = dma.vmem_to_hbm [thread:$0]  (%p1267_p3), %s567_s12, 256, %s569_s15, %s1375_s14, %s1457_s29, %s1456_s21, %s1455_s9  }
 0x250 PF: > { %s583_s13 = sand.u32 1, %s1111_s24   ;;  %p1458_p0 = scmp.ge.s32.totalorder %s1123_s27, 2 }
 0x251   : > { %s584_s30 = scalar_lea.sflag [#allocation4], %s583_s13 }
 0x252   : > { %p797_p5 = pnand %p1458_p0, %p1220_p6 }
 0x254   : > { %p798_p7 = pneg %p797_p5 }
 0x256   : > { %1102 = dma.done.wait (%p798_p7), %s584_s30, 256  }
 0x257   : > { %1104 = vsyncadd (%p798_p7), %s584_s30, 4294967040  ;;  %s1459_s22 = sadd.s32 4294967294, %s1123_s27  }
 0x258   : > { %s593_s17 = sand.u32 1, %s1459_s22  }
 0x259   : > { %s594_s23 = scalar_lea.sflag [#allocation12], %s593_s17 }
 0x25a   : > { %1106 = dma.done.wait (%p798_p7), %s594_s23, 512  }
 0x25b   : > { %1108 = vsyncadd (%p798_p7), %s594_s23, 4294966784  ;;  %p26_p3 = scmp.ge.s32.totalorder %s1254_s16, 4   ;;  %s1460_s24 = smov %s1115_s25 }
 0x25c   : > { %s1461_s25 = smov %s1119_s26  ;;  %s1462_s26 = smov %s1263_s19 }
 0x25d   : > { %s1463_s27 = smov %s1254_s16  ;;  %28 = sbr.rel (!%p26_p3) target bundleno = 13 (0xd), region = 132 }
 0x262   :  { %610 = vsyncpa [#allocation3], 1 }
 0x263   :  { %612 = vsyncpa [#allocation3 + $0x1], 1 }
 0x264   :  { %613 = vsyncpa [#allocation6], 1 }
 0x265   :  { %614 = vsyncpa [#allocation9], 1 }
 0x266   :  { %615 = vsyncpa [#allocation4], 1 }
 0x267   :  { %617 = vsyncpa [#allocation4 + $0x1], 1 }
 0x268   :  { %618 = vsyncpa [#allocation12], 1 }
 0x269   :  { %620 = vsyncpa [#allocation12 + $0x1], 1 }

</bundles_post_ra>
